<compile_context>
chip_gen: v7x
topology: tpu7x:2x2x1
jax: 0.10.0
libtpu: 0.0.40
codegen_flags: <defaults>
</compile_context>

<pallas_src>
import math

import numpy as np
import jax
import jax.numpy as jnp
from jax.experimental import pallas as pl
from jax.experimental.pallas import tpu as pltpu

# ---- small synthetic config consistent with the module ----
BATCH = 2
SEQ = 8
N_CLASSES = 4                      # ['Bar', 'Position', 'Pitch', 'Duration']
EMB_SIZE = 256                     # emb_sizes = [256, 256, 256, 256]
N_TOKENS = [4, 17, 87, 65]         # len(e2w[key]) per class (synthetic)
HIDDEN = 32                        # bertConfig.hidden_size
NUM_HEADS = 2
HEAD_DIM = HIDDEN // NUM_HEADS
INTERMEDIATE = 64                  # bertConfig.intermediate_size
SPLIT_LAYER = 1                    # layers run fully before the split
LN_EPS = 1e-12                     # HF BERT layer_norm_eps

CLASS_OFFSETS = [0]
for _n in N_TOKENS[:-1]:
    CLASS_OFFSETS.append(CLASS_OFFSETS[-1] + _n)
N_TOK_TOTAL = sum(N_TOKENS)


def _pad8(n):
    return (n + 7) & ~7


N_TOK_PAD = _pad8(N_TOK_TOTAL)     # 176
SLAB_COLS = 64                     # widest packed parameter (wi / bi)


# ---------------------------------------------------------------------------
# static row layout of the single packed f32 parameter slab
# ---------------------------------------------------------------------------
class _Layout:
    def __init__(self):
        self.entries = {}          # name -> (row_offset, (rows, cols))
        self.rows = 0

    def add(self, name, shape):
        assert len(shape) == 2 and shape[1] <= SLAB_COLS
        self.entries[name] = (self.rows, shape)
        self.rows += _pad8(shape[0])      # 8-row align every entry


def _build_layout():
    lay = _Layout()
    lay.add("table", (N_TOK_PAD, HIDDEN))          # folded embeddings (+ b_in)

    def add_attn(p):
        for h in range(NUM_HEADS):
            hp = f"{p}h{h}."
            lay.add(hp + "wq", (HIDDEN, HEAD_DIM))
            lay.add(hp + "wk", (HIDDEN, HEAD_DIM))
            lay.add(hp + "wv", (HIDDEN, HEAD_DIM))
            lay.add(hp + "bq", (1, HEAD_DIM))
            lay.add(hp + "bk", (1, HEAD_DIM))
            lay.add(hp + "bv", (1, HEAD_DIM))
            lay.add(hp + "wo", (HEAD_DIM, HIDDEN))
        lay.add(p + "bo", (1, HIDDEN))
        lay.add(p + "g1", (1, HIDDEN))
        lay.add(p + "be1", (1, HIDDEN))

    for l in range(SPLIT_LAYER):
        p = f"L{l}."
        add_attn(p)
        lay.add(p + "wi", (HIDDEN, INTERMEDIATE))
        lay.add(p + "bi", (1, INTERMEDIATE))
        lay.add(p + "wf", (INTERMEDIATE, HIDDEN))
        lay.add(p + "bf", (1, HIDDEN))
        lay.add(p + "g2", (1, HIDDEN))
        lay.add(p + "be2", (1, HIDDEN))
    add_attn("S.")
    lay.add("S.wi", (HIDDEN, INTERMEDIATE))
    lay.add("S.bi", (1, INTERMEDIATE))
    return lay


_LAYOUT = _build_layout()
SLAB_ROWS = _pad8(_LAYOUT.rows)


# ---------------------------------------------------------------------------
# in-kernel helpers
# ---------------------------------------------------------------------------
def _ld(slab_ref, name):
    """Static (zero-cost view) slice of the packed parameter slab."""
    row, (r, c) = _LAYOUT.entries[name]
    return slab_ref[row:row + r, 0:c]


def _layernorm(x, g, b):
    mu = jnp.mean(x, axis=-1, keepdims=True)
    var = jnp.mean(jnp.square(x - mu), axis=-1, keepdims=True)
    return (x - mu) * jax.lax.rsqrt(var + LN_EPS) * g + b


def _gelu(x):
    # Exact erf-GELU (HF BERT "gelu") via A&S 7.1.26 (|err| < 1.5e-7); uses
    # only exp/mul/add/div so it is guaranteed to lower on Mosaic.  f32 only.
    z = x * (1.0 / math.sqrt(2.0))
    az = jnp.abs(z)
    t = 1.0 / (1.0 + 0.3275911 * az)
    poly = t * (0.254829592 + t * (-0.284496736 + t * (1.421413741
              + t * (-1.453152027 + t * 1.061405429))))
    erf_abs = 1.0 - poly * jnp.exp(-az * az)
    erf_z = jnp.where(z >= 0.0, erf_abs, -erf_abs)
    return 0.5 * x * (1.0 + erf_z)


def _attn_block(slab_ref, p, x2, am, B, S):
    """BertAttention: per-head MHA (weights pre-split / pre-scaled at init),
    output dense + residual LayerNorm.  x2: [B*S, H] f32, am: [B, 1, S]."""
    BS = B * S
    attn = None
    for h in range(NUM_HEADS):                       # NH=2, fully unrolled
        hp = f"{p}h{h}."
        q = jnp.dot(x2, _ld(slab_ref, hp + "wq"),
                    preferred_element_type=jnp.float32) + _ld(slab_ref, hp + "bq")
        k = jnp.dot(x2, _ld(slab_ref, hp + "wk"),
                    preferred_element_type=jnp.float32) + _ld(slab_ref, hp + "bk")
        v = jnp.dot(x2, _ld(slab_ref, hp + "wv"),
                    preferred_element_type=jnp.float32) + _ld(slab_ref, hp + "bv")
        q3 = q.reshape(B, S, HEAD_DIM)               # leading-dim split (layout-free)
        k3 = k.reshape(B, S, HEAD_DIM)
        v3 = v.reshape(B, S, HEAD_DIM)
        # wq/bq pre-scaled by 1/sqrt(head_dim) at init -> scores already scaled
        s = jnp.einsum("bqd,bkd->bqk", q3, k3,
                       preferred_element_type=jnp.float32) + am
        s = s - jnp.max(s, axis=-1, keepdims=True)
        e = jnp.exp(s)
        prob = e / jnp.sum(e, axis=-1, keepdims=True)        # exact (int8 parity)
        ctx = jnp.einsum("bqk,bkd->bqd", prob, v3,
                         preferred_element_type=jnp.float32)
        part = jnp.dot(ctx.reshape(BS, HEAD_DIM), _ld(slab_ref, hp + "wo"),
                       preferred_element_type=jnp.float32)
        attn = part if attn is None else attn + part
    attn = attn + _ld(slab_ref, p + "bo")
    return _layernorm(attn + x2, _ld(slab_ref, p + "g1"), _ld(slab_ref, p + "be1"))


# ---------------------------------------------------------------------------
# single fused kernel: gather+folded in_linear -> BERT layers -> split + quant
# ---------------------------------------------------------------------------
def _fused_forward_kernel(ids_ref, mask_ref, slab_ref, out_ref):
    B, _, S = mask_ref.shape
    BS = B * S

    # ---- embedding gather + folded (sqrt(d)*in_linear + b_in) --------------
    # ids_ref: [BS*4, 1] int32, already offset into packed table rows.
    ids = ids_ref[...]
    vid = jax.lax.broadcasted_iota(jnp.int32, (BS * N_CLASSES, N_TOK_PAD), 1)
    onehot = (ids == vid).astype(jnp.float32)                       # [64, 176]
    rows = jnp.dot(onehot, _ld(slab_ref, "table"),
                   preferred_element_type=jnp.float32)              # [64, 32]
    # sum each token's 4 class rows: csum[t, r] = 1 iff r in [4t, 4t+4)
    tok = jax.lax.broadcasted_iota(jnp.int32, (BS, BS * N_CLASSES), 0)
    src = jax.lax.broadcasted_iota(jnp.int32, (BS, BS * N_CLASSES), 1)
    d = src - N_CLASSES * tok
    csum = jnp.logical_and(d >= 0, d < N_CLASSES).astype(jnp.float32)  # [16, 64]
    x = jnp.dot(csum, rows, preferred_element_type=jnp.float32)     # [BS, H]

    # ---- additive attention mask, built once and reused by every layer -----
    am = (1.0 - mask_ref[...]) * -10000.0                           # [B, 1, S]

    # ---- full BERT encoder layers before the split --------------------------
    for l in range(SPLIT_LAYER):
        p = f"L{l}."
        a = _attn_block(slab_ref, p, x, am, B, S)
        inter = _gelu(jnp.dot(a, _ld(slab_ref, p + "wi"),
                              preferred_element_type=jnp.float32)
                      + _ld(slab_ref, p + "bi"))
        ffn = jnp.dot(inter, _ld(slab_ref, p + "wf"),
                      preferred_element_type=jnp.float32) + _ld(slab_ref, p + "bf")
        x = _layernorm(ffn + a, _ld(slab_ref, p + "g2"), _ld(slab_ref, p + "be2"))

    # ---- split block: attention + intermediate dense (NO activation) --------
    a = _attn_block(slab_ref, "S.", x, am, B, S)
    inter = jnp.dot(a, _ld(slab_ref, "S.wi"),
                    preferred_element_type=jnp.float32) + _ld(slab_ref, "S.bi")

    # torch.quantize_per_tensor(scale=1.0, zero_point=0, qint8).int_repr():
    #   q = clamp(round_half_even(x), -128, 127), stored directly as int8.
    q = jnp.clip(jnp.round(inter), -128.0, 127.0)
    out_ref[...] = q.astype(jnp.int8)


# ---------------------------------------------------------------------------
# parameters (deterministic, synthetic) + one-time fold/fuse/pack
# ---------------------------------------------------------------------------
def init_params(key):
    keys = iter(jax.random.split(key, 64))

    def nrm(shape, scale=0.02):
        return scale * jax.random.normal(next(keys), shape, dtype=jnp.float32)

    def attn_params():
        return dict(
            wq=nrm((HIDDEN, HIDDEN)), bq=jnp.zeros((1, HIDDEN), jnp.float32),
            wk=nrm((HIDDEN, HIDDEN)), bk=jnp.zeros((1, HIDDEN), jnp.float32),
            wv=nrm((HIDDEN, HIDDEN)), bv=jnp.zeros((1, HIDDEN), jnp.float32),
            wo=nrm((HIDDEN, HIDDEN)), bo=jnp.zeros((1, HIDDEN), jnp.float32),
            g1=jnp.ones((1, HIDDEN), jnp.float32),
            be1=jnp.zeros((1, HIDDEN), jnp.float32),
        )

    params = {
        "emb": [nrm((N_TOKENS[i], EMB_SIZE)) for i in range(N_CLASSES)],
        "w_in": nrm((N_CLASSES * EMB_SIZE, HIDDEN)),    # pre-transposed [in, out]
        "b_in": jnp.zeros((1, HIDDEN), jnp.float32),
        "layers": [],
    }
    for _ in range(SPLIT_LAYER):
        lp = attn_params()
        lp.update(
            wi=nrm((HIDDEN, INTERMEDIATE)),
            bi=jnp.zeros((1, INTERMEDIATE), jnp.float32),
            wf=nrm((INTERMEDIATE, HIDDEN)),
            bf=jnp.zeros((1, HIDDEN), jnp.float32),
            g2=jnp.ones((1, HIDDEN), jnp.float32),
            be2=jnp.zeros((1, HIDDEN), jnp.float32),
        )
        params["layers"].append(lp)
    sp = attn_params()
    sp.update(wi=nrm((HIDDEN, INTERMEDIATE), scale=1.0),
              bi=jnp.zeros((1, INTERMEDIATE), jnp.float32))
    params["split"] = sp
    return params


def prepare_params(params):
    """One-time fold/fuse/pack of every parameter into a single f32 slab.

    Folds sqrt(EMB_SIZE) scaling + in_linear (incl. b_in) into the embedding
    tables, folds 1/sqrt(head_dim) into wq/bq, splits Q/K/V/Wo per head.
    All the per-call XLA glue of the previous version now happens exactly once.
    """
    slab = np.zeros((SLAB_ROWS, SLAB_COLS), np.float32)

    def put(name, arr):
        row, shape = _LAYOUT.entries[name]
        a = np.asarray(arr, np.float32).reshape(shape)
        slab[row:row + shape[0], :shape[1]] = a

    # folded embedding tables (b_in folded into class 0: added once per token)
    w_in = np.asarray(params["w_in"], np.float32)
    b_in = np.asarray(params["b_in"], np.float32)
    table = np.zeros((N_TOK_PAD, HIDDEN), np.float32)
    for c in range(N_CLASSES):
        emb = np.asarray(params["emb"][c], np.float32) * math.sqrt(EMB_SIZE)
        fold = emb @ w_in[c * EMB_SIZE:(c + 1) * EMB_SIZE, :]
        if c == 0:
            fold = fold + b_in
        table[CLASS_OFFSETS[c]:CLASS_OFFSETS[c] + N_TOKENS[c], :] = fold
    put("table", table)

    def put_attn(p, lp):
        inv = 1.0 / math.sqrt(HEAD_DIM)
        wq, wk, wv, wo = (np.asarray(lp[k], np.float32)
                          for k in ("wq", "wk", "wv", "wo"))
        bq, bk, bv = (np.asarray(lp[k], np.float32) for k in ("bq", "bk", "bv"))
        for h in range(NUM_HEADS):
            sl = slice(h * HEAD_DIM, (h + 1) * HEAD_DIM)
            hp = f"{p}h{h}."
            put(hp + "wq", wq[:, sl] * inv)           # 1/sqrt(dh) folded in
            put(hp + "bq", bq[:, sl] * inv)
            put(hp + "wk", wk[:, sl]); put(hp + "bk", bk[:, sl])
            put(hp + "wv", wv[:, sl]); put(hp + "bv", bv[:, sl])
            put(hp + "wo", wo[sl, :])
        put(p + "bo", lp["bo"]); put(p + "g1", lp["g1"]); put(p + "be1", lp["be1"])

    for l, lp in enumerate(params["layers"]):
        p = f"L{l}."
        put_attn(p, lp)
        put(p + "wi", lp["wi"]); put(p + "bi", lp["bi"])
        put(p + "wf", lp["wf"]); put(p + "bf", lp["bf"])
        put(p + "g2", lp["g2"]); put(p + "be2", lp["be2"])
    put_attn("S.", params["split"])
    put("S.wi", params["split"]["wi"]); put("S.bi", params["split"]["bi"])
    return jnp.asarray(slab)


# ---------------------------------------------------------------------------
# forward (wrapper = a handful of tiny glue ops + ONE fused kernel call)
# ---------------------------------------------------------------------------
def _spec(shape):
    zeros = (0,) * len(shape)
    return pl.BlockSpec(shape, lambda i, z=zeros: z)


def midibert_front_ffn_quant(slab, input_ids, attn_mask=None):
    B, S, _ = input_ids.shape
    # offset each class's ids into the packed folded-table row space, flatten
    ids = (input_ids + jnp.asarray(CLASS_OFFSETS, jnp.int32)).reshape(-1, 1)
    if attn_mask is None:
        mask = jnp.ones((B, 1, S), jnp.float32)
    else:
        mask = attn_mask.astype(jnp.float32).reshape(B, 1, S)

    out_shape = jax.ShapeDtypeStruct((B * S, INTERMEDIATE), jnp.int8)
    q2d = pl.pallas_call(
        _fused_forward_kernel,
        out_shape=out_shape,
        grid=(1,),
        in_specs=[_spec(ids.shape), _spec(mask.shape), _spec(slab.shape)],
        out_specs=_spec(out_shape.shape),
        compiler_params=pltpu.CompilerParams(dimension_semantics=("arbitrary",)),
    )(ids, mask, slab)
    # int8 int_repr of the torch.qint8 tensor (scale=1.0, zero_point=0)
    return q2d.reshape(B, S, INTERMEDIATE)


if __name__ == "__main__":
    key = jax.random.PRNGKey(0)
    pkey, ikey = jax.random.split(key)
    params = init_params(pkey)
    slab = prepare_params(params)            # one-time fold/fuse/pack (not per-call)

    raw = jax.random.randint(ikey, (BATCH, SEQ, N_CLASSES), 0, 10_000,
                             dtype=jnp.int32)
    input_ids = raw % jnp.asarray(N_TOKENS, dtype=jnp.int32)        # [2, 8, 4]
    attn_mask = jnp.ones((BATCH, SEQ), jnp.float32).at[1, SEQ - 2:].set(0.0)

    fwd = jax.jit(midibert_front_ffn_quant)
    out = fwd(slab, input_ids, attn_mask)
    out = jax.block_until_ready(out)
    assert out.shape == (BATCH, SEQ, INTERMEDIATE)
    assert out.dtype == jnp.int8
    print("KERNEL_OK")
</pallas_src>

<mosaic_0001>
module attributes {stable_mosaic.version = 11 : i64} {
  func.func @_fused_forward_kernel(%arg0: i32, %arg1: memref<64x1xi32, #tpu.memory_space<vmem>>, %arg2: memref<2x1x8xf32, #tpu.memory_space<vmem>>, %arg3: memref<936x64xf32, #tpu.memory_space<vmem>>, %arg4: memref<16x64xi8, #tpu.memory_space<vmem>>) attributes {dimension_semantics = [#tpu.dimension_semantics<arbitrary>], iteration_bounds = array<i64: 1>, scalar_prefetch = 0 : i64, scratch_operands = 0 : i64, tpu.core_type = #tpu.core_type<tc>, window_params = [{pipeline_mode = #tpu.pipeline_mode<synchronous>, transform_indices = @transform_0, window_bounds = array<i64: 64, 1>}, {pipeline_mode = #tpu.pipeline_mode<synchronous>, transform_indices = @transform_1, window_bounds = array<i64: 2, 1, 8>}, {pipeline_mode = #tpu.pipeline_mode<synchronous>, transform_indices = @transform_2, window_bounds = array<i64: 936, 64>}, {pipeline_mode = #tpu.pipeline_mode<synchronous>, transform_indices = @transform_3, window_bounds = array<i64: 16, 64>}]} {
    %c0 = arith.constant 0 : index
    %c0_0 = arith.constant 0 : index
    %0 = vector.load %arg1[%c0, %c0_0] : memref<64x1xi32, #tpu.memory_space<vmem>>, vector<64x1xi32>
    %1 = tpu.iota {dimensions = array<i32: 1>} : vector<64x176xi32>
    %2 = vector.broadcast %0 : vector<64x1xi32> to vector<64x176xi32>
    %3 = arith.cmpi eq, %2, %1 : vector<64x176xi32>
    %4 = arith.extui %3 : vector<64x176xi1> to vector<64x176xi32>
    %5 = arith.sitofp %4 : vector<64x176xi32> to vector<64x176xf32>
    %c0_1 = arith.constant 0 : index
    %c0_2 = arith.constant 0 : index
    %6 = vector.load %arg3[%c0_1, %c0_2] : memref<936x64xf32, #tpu.memory_space<vmem>>, vector<176x32xf32>
    %cst = arith.constant dense<0.000000e+00> : vector<64x32xf32>
    %7 = tpu.matmul %5, %6, %cst {dimension_numbers = #tpu.dot_dimension_numbers<[1], [0], [0], [1], [0, 0, 1, 1], [], []>} : vector<64x176xf32>, vector<176x32xf32>, vector<64x32xf32> -> vector<64x32xf32>
    %8 = tpu.iota {dimensions = array<i32: 0>} : vector<16x64xi32>
    %9 = tpu.iota {dimensions = array<i32: 1>} : vector<16x64xi32>
    %c4_i32 = arith.constant 4 : i32
    %10 = vector.broadcast %c4_i32 : i32 to vector<16x64xi32>
    %11 = arith.muli %10, %8 : vector<16x64xi32>
    %12 = arith.subi %9, %11 : vector<16x64xi32>
    %c0_i32 = arith.constant 0 : i32
    %13 = vector.broadcast %c0_i32 : i32 to vector<16x64xi32>
    %14 = arith.cmpi sge, %12, %13 : vector<16x64xi32>
    %c4_i32_3 = arith.constant 4 : i32
    %15 = vector.broadcast %c4_i32_3 : i32 to vector<16x64xi32>
    %16 = arith.cmpi slt, %12, %15 : vector<16x64xi32>
    %17 = arith.andi %14, %16 : vector<16x64xi1>
    %18 = arith.extui %17 : vector<16x64xi1> to vector<16x64xi32>
    %19 = arith.sitofp %18 : vector<16x64xi32> to vector<16x64xf32>
    %cst_4 = arith.constant dense<0.000000e+00> : vector<16x32xf32>
    %20 = tpu.matmul %19, %7, %cst_4 {dimension_numbers = #tpu.dot_dimension_numbers<[1], [0], [0], [1], [0, 0, 1, 1], [], []>} : vector<16x64xf32>, vector<64x32xf32>, vector<16x32xf32> -> vector<16x32xf32>
    %c0_5 = arith.constant 0 : index
    %c0_6 = arith.constant 0 : index
    %c0_7 = arith.constant 0 : index
    %21 = vector.load %arg2[%c0_5, %c0_6, %c0_7] : memref<2x1x8xf32, #tpu.memory_space<vmem>>, vector<2x1x8xf32>
    %cst_8 = arith.constant 1.000000e+00 : f32
    %22 = vector.broadcast %cst_8 : f32 to vector<2x1x8xf32>
    %23 = arith.subf %22, %21 : vector<2x1x8xf32>
    %cst_9 = arith.constant -1.000000e+04 : f32
    %24 = vector.broadcast %cst_9 : f32 to vector<2x1x8xf32>
    %25 = arith.mulf %23, %24 : vector<2x1x8xf32>
    %c176 = arith.constant 176 : index
    %c0_10 = arith.constant 0 : index
    %26 = vector.load %arg3[%c176, %c0_10] : memref<936x64xf32, #tpu.memory_space<vmem>>, vector<32x16xf32>
    %cst_11 = arith.constant dense<0.000000e+00> : vector<16x16xf32>
    %27 = tpu.matmul %20, %26, %cst_11 {dimension_numbers = #tpu.dot_dimension_numbers<[1], [0], [0], [1], [0, 0, 1, 1], [], []>} : vector<16x32xf32>, vector<32x16xf32>, vector<16x16xf32> -> vector<16x16xf32>
    %c272 = arith.constant 272 : index
    %c0_12 = arith.constant 0 : index
    %28 = vector.load %arg3[%c272, %c0_12] : memref<936x64xf32, #tpu.memory_space<vmem>>, vector<1x16xf32>
    %29 = vector.broadcast %28 : vector<1x16xf32> to vector<16x16xf32>
    %30 = arith.addf %27, %29 : vector<16x16xf32>
    %c208 = arith.constant 208 : index
    %c0_13 = arith.constant 0 : index
    %31 = vector.load %arg3[%c208, %c0_13] : memref<936x64xf32, #tpu.memory_space<vmem>>, vector<32x16xf32>
    %cst_14 = arith.constant dense<0.000000e+00> : vector<16x16xf32>
    %32 = tpu.matmul %20, %31, %cst_14 {dimension_numbers = #tpu.dot_dimension_numbers<[1], [0], [0], [1], [0, 0, 1, 1], [], []>} : vector<16x32xf32>, vector<32x16xf32>, vector<16x16xf32> -> vector<16x16xf32>
    %c280 = arith.constant 280 : index
    %c0_15 = arith.constant 0 : index
    %33 = vector.load %arg3[%c280, %c0_15] : memref<936x64xf32, #tpu.memory_space<vmem>>, vector<1x16xf32>
    %34 = vector.broadcast %33 : vector<1x16xf32> to vector<16x16xf32>
    %35 = arith.addf %32, %34 : vector<16x16xf32>
    %c240 = arith.constant 240 : index
    %c0_16 = arith.constant 0 : index
    %36 = vector.load %arg3[%c240, %c0_16] : memref<936x64xf32, #tpu.memory_space<vmem>>, vector<32x16xf32>
    %cst_17 = arith.constant dense<0.000000e+00> : vector<16x16xf32>
    %37 = tpu.matmul %20, %36, %cst_17 {dimension_numbers = #tpu.dot_dimension_numbers<[1], [0], [0], [1], [0, 0, 1, 1], [], []>} : vector<16x32xf32>, vector<32x16xf32>, vector<16x16xf32> -> vector<16x16xf32>
    %c288 = arith.constant 288 : index
    %c0_18 = arith.constant 0 : index
    %38 = vector.load %arg3[%c288, %c0_18] : memref<936x64xf32, #tpu.memory_space<vmem>>, vector<1x16xf32>
    %39 = vector.broadcast %38 : vector<1x16xf32> to vector<16x16xf32>
    %40 = arith.addf %37, %39 : vector<16x16xf32>
    %41 = vector.shape_cast %30 : vector<16x16xf32> to vector<2x8x16xf32>
    %42 = vector.shape_cast %35 : vector<16x16xf32> to vector<2x8x16xf32>
    %43 = vector.shape_cast %40 : vector<16x16xf32> to vector<2x8x16xf32>
    "tpu.trace_start"() <{level = 10 : i32, message = "bqd,bkd->bqk"}> : () -> ()
    %cst_19 = arith.constant dense<0.000000e+00> : vector<2x8x8xf32>
    %44 = tpu.matmul %41, %42, %cst_19 {dimension_numbers = #tpu.dot_dimension_numbers<[2], [2], [1], [1], [0, 0, 0, 1, 1, 1], [0], [0]>} : vector<2x8x16xf32>, vector<2x8x16xf32>, vector<2x8x8xf32> -> vector<2x8x8xf32>
    "tpu.trace_stop"() : () -> ()
    %45 = vector.broadcast %25 : vector<2x1x8xf32> to vector<2x8x8xf32>
    %46 = arith.addf %44, %45 : vector<2x8x8xf32>
    %cst_20 = arith.constant dense<0xFF800000> : vector<2x8xf32>
    %47 = vector.multi_reduction <maximumf>, %46, %cst_20 [2] : vector<2x8x8xf32> to vector<2x8xf32>
    %48 = vector.shape_cast %47 : vector<2x8xf32> to vector<2x8x1xf32>
    %49 = vector.broadcast %48 : vector<2x8x1xf32> to vector<2x8x8xf32>
    %50 = arith.subf %46, %49 : vector<2x8x8xf32>
    %51 = math.exp %50 : vector<2x8x8xf32>
    %cst_21 = arith.constant dense<0.000000e+00> : vector<2x8xf32>
    %52 = vector.multi_reduction <add>, %51, %cst_21 [2] : vector<2x8x8xf32> to vector<2x8xf32>
    %53 = vector.shape_cast %52 : vector<2x8xf32> to vector<2x8x1xf32>
    %54 = vector.broadcast %53 : vector<2x8x1xf32> to vector<2x8x8xf32>
    %55 = arith.divf %51, %54 : vector<2x8x8xf32>
    "tpu.trace_start"() <{level = 10 : i32, message = "bqk,bkd->bqd"}> : () -> ()
    %cst_22 = arith.constant dense<0.000000e+00> : vector<2x8x16xf32>
    %56 = tpu.matmul %55, %43, %cst_22 {dimension_numbers = #tpu.dot_dimension_numbers<[2], [1], [1], [2], [0, 0, 0, 1, 1, 2], [0], [0]>} : vector<2x8x8xf32>, vector<2x8x16xf32>, vector<2x8x16xf32> -> vector<2x8x16xf32>
    "tpu.trace_stop"() : () -> ()
    %57 = vector.shape_cast %56 : vector<2x8x16xf32> to vector<16x16xf32>
    %c296 = arith.constant 296 : index
    %c0_23 = arith.constant 0 : index
    %58 = vector.load %arg3[%c296, %c0_23] : memref<936x64xf32, #tpu.memory_space<vmem>>, vector<16x32xf32>
    %cst_24 = arith.constant dense<0.000000e+00> : vector<16x32xf32>
    %59 = tpu.matmul %57, %58, %cst_24 {dimension_numbers = #tpu.dot_dimension_numbers<[1], [0], [0], [1], [0, 0, 1, 1], [], []>} : vector<16x16xf32>, vector<16x32xf32>, vector<16x32xf32> -> vector<16x32xf32>
    %c312 = arith.constant 312 : index
    %c0_25 = arith.constant 0 : index
    %60 = vector.load %arg3[%c312, %c0_25] : memref<936x64xf32, #tpu.memory_space<vmem>>, vector<32x16xf32>
    %cst_26 = arith.constant dense<0.000000e+00> : vector<16x16xf32>
    %61 = tpu.matmul %20, %60, %cst_26 {dimension_numbers = #tpu.dot_dimension_numbers<[1], [0], [0], [1], [0, 0, 1, 1], [], []>} : vector<16x32xf32>, vector<32x16xf32>, vector<16x16xf32> -> vector<16x16xf32>
    %c408 = arith.constant 408 : index
    %c0_27 = arith.constant 0 : index
    %62 = vector.load %arg3[%c408, %c0_27] : memref<936x64xf32, #tpu.memory_space<vmem>>, vector<1x16xf32>
    %63 = vector.broadcast %62 : vector<1x16xf32> to vector<16x16xf32>
    %64 = arith.addf %61, %63 : vector<16x16xf32>
    %c344 = arith.constant 344 : index
    %c0_28 = arith.constant 0 : index
    %65 = vector.load %arg3[%c344, %c0_28] : memref<936x64xf32, #tpu.memory_space<vmem>>, vector<32x16xf32>
    %cst_29 = arith.constant dense<0.000000e+00> : vector<16x16xf32>
    %66 = tpu.matmul %20, %65, %cst_29 {dimension_numbers = #tpu.dot_dimension_numbers<[1], [0], [0], [1], [0, 0, 1, 1], [], []>} : vector<16x32xf32>, vector<32x16xf32>, vector<16x16xf32> -> vector<16x16xf32>
    %c416 = arith.constant 416 : index
    %c0_30 = arith.constant 0 : index
    %67 = vector.load %arg3[%c416, %c0_30] : memref<936x64xf32, #tpu.memory_space<vmem>>, vector<1x16xf32>
    %68 = vector.broadcast %67 : vector<1x16xf32> to vector<16x16xf32>
    %69 = arith.addf %66, %68 : vector<16x16xf32>
    %c376 = arith.constant 376 : index
    %c0_31 = arith.constant 0 : index
    %70 = vector.load %arg3[%c376, %c0_31] : memref<936x64xf32, #tpu.memory_space<vmem>>, vector<32x16xf32>
    %cst_32 = arith.constant dense<0.000000e+00> : vector<16x16xf32>
    %71 = tpu.matmul %20, %70, %cst_32 {dimension_numbers = #tpu.dot_dimension_numbers<[1], [0], [0], [1], [0, 0, 1, 1], [], []>} : vector<16x32xf32>, vector<32x16xf32>, vector<16x16xf32> -> vector<16x16xf32>
    %c424 = arith.constant 424 : index
    %c0_33 = arith.constant 0 : index
    %72 = vector.load %arg3[%c424, %c0_33] : memref<936x64xf32, #tpu.memory_space<vmem>>, vector<1x16xf32>
    %73 = vector.broadcast %72 : vector<1x16xf32> to vector<16x16xf32>
    %74 = arith.addf %71, %73 : vector<16x16xf32>
    %75 = vector.shape_cast %64 : vector<16x16xf32> to vector<2x8x16xf32>
    %76 = vector.shape_cast %69 : vector<16x16xf32> to vector<2x8x16xf32>
    %77 = vector.shape_cast %74 : vector<16x16xf32> to vector<2x8x16xf32>
    "tpu.trace_start"() <{level = 10 : i32, message = "bqd,bkd->bqk"}> : () -> ()
    %cst_34 = arith.constant dense<0.000000e+00> : vector<2x8x8xf32>
    %78 = tpu.matmul %75, %76, %cst_34 {dimension_numbers = #tpu.dot_dimension_numbers<[2], [2], [1], [1], [0, 0, 0, 1, 1, 1], [0], [0]>} : vector<2x8x16xf32>, vector<2x8x16xf32>, vector<2x8x8xf32> -> vector<2x8x8xf32>
    "tpu.trace_stop"() : () -> ()
    %79 = vector.broadcast %25 : vector<2x1x8xf32> to vector<2x8x8xf32>
    %80 = arith.addf %78, %79 : vector<2x8x8xf32>
    %cst_35 = arith.constant dense<0xFF800000> : vector<2x8xf32>
    %81 = vector.multi_reduction <maximumf>, %80, %cst_35 [2] : vector<2x8x8xf32> to vector<2x8xf32>
    %82 = vector.shape_cast %81 : vector<2x8xf32> to vector<2x8x1xf32>
    %83 = vector.broadcast %82 : vector<2x8x1xf32> to vector<2x8x8xf32>
    %84 = arith.subf %80, %83 : vector<2x8x8xf32>
    %85 = math.exp %84 : vector<2x8x8xf32>
    %cst_36 = arith.constant dense<0.000000e+00> : vector<2x8xf32>
    %86 = vector.multi_reduction <add>, %85, %cst_36 [2] : vector<2x8x8xf32> to vector<2x8xf32>
    %87 = vector.shape_cast %86 : vector<2x8xf32> to vector<2x8x1xf32>
    %88 = vector.broadcast %87 : vector<2x8x1xf32> to vector<2x8x8xf32>
    %89 = arith.divf %85, %88 : vector<2x8x8xf32>
    "tpu.trace_start"() <{level = 10 : i32, message = "bqk,bkd->bqd"}> : () -> ()
    %cst_37 = arith.constant dense<0.000000e+00> : vector<2x8x16xf32>
    %90 = tpu.matmul %89, %77, %cst_37 {dimension_numbers = #tpu.dot_dimension_numbers<[2], [1], [1], [2], [0, 0, 0, 1, 1, 2], [0], [0]>} : vector<2x8x8xf32>, vector<2x8x16xf32>, vector<2x8x16xf32> -> vector<2x8x16xf32>
    "tpu.trace_stop"() : () -> ()
    %91 = vector.shape_cast %90 : vector<2x8x16xf32> to vector<16x16xf32>
    %c432 = arith.constant 432 : index
    %c0_38 = arith.constant 0 : index
    %92 = vector.load %arg3[%c432, %c0_38] : memref<936x64xf32, #tpu.memory_space<vmem>>, vector<16x32xf32>
    %cst_39 = arith.constant dense<0.000000e+00> : vector<16x32xf32>
    %93 = tpu.matmul %91, %92, %cst_39 {dimension_numbers = #tpu.dot_dimension_numbers<[1], [0], [0], [1], [0, 0, 1, 1], [], []>} : vector<16x16xf32>, vector<16x32xf32>, vector<16x32xf32> -> vector<16x32xf32>
    %94 = arith.addf %59, %93 : vector<16x32xf32>
    %c448 = arith.constant 448 : index
    %c0_40 = arith.constant 0 : index
    %95 = vector.load %arg3[%c448, %c0_40] : memref<936x64xf32, #tpu.memory_space<vmem>>, vector<1x32xf32>
    %96 = vector.broadcast %95 : vector<1x32xf32> to vector<16x32xf32>
    %97 = arith.addf %94, %96 : vector<16x32xf32>
    %98 = arith.addf %97, %20 : vector<16x32xf32>
    %c456 = arith.constant 456 : index
    %c0_41 = arith.constant 0 : index
    %99 = vector.load %arg3[%c456, %c0_41] : memref<936x64xf32, #tpu.memory_space<vmem>>, vector<1x32xf32>
    %c464 = arith.constant 464 : index
    %c0_42 = arith.constant 0 : index
    %100 = vector.load %arg3[%c464, %c0_42] : memref<936x64xf32, #tpu.memory_space<vmem>>, vector<1x32xf32>
    %cst_43 = arith.constant dense<0.000000e+00> : vector<16xf32>
    %101 = vector.multi_reduction <add>, %98, %cst_43 [1] : vector<16x32xf32> to vector<16xf32>
    %102 = vector.shape_cast %101 : vector<16xf32> to vector<16x1xf32>
    %cst_44 = arith.constant 3.200000e+01 : f32
    %103 = vector.broadcast %cst_44 : f32 to vector<16x1xf32>
    %104 = arith.divf %102, %103 : vector<16x1xf32>
    %105 = vector.broadcast %104 : vector<16x1xf32> to vector<16x32xf32>
    %106 = arith.subf %98, %105 : vector<16x32xf32>
    %107 = arith.mulf %106, %106 : vector<16x32xf32>
    %cst_45 = arith.constant dense<0.000000e+00> : vector<16xf32>
    %108 = vector.multi_reduction <add>, %107, %cst_45 [1] : vector<16x32xf32> to vector<16xf32>
    %109 = vector.shape_cast %108 : vector<16xf32> to vector<16x1xf32>
    %cst_46 = arith.constant 3.200000e+01 : f32
    %110 = vector.broadcast %cst_46 : f32 to vector<16x1xf32>
    %111 = arith.divf %109, %110 : vector<16x1xf32>
    %112 = vector.broadcast %104 : vector<16x1xf32> to vector<16x32xf32>
    %113 = arith.subf %98, %112 : vector<16x32xf32>
    %cst_47 = arith.constant 9.99999996E-13 : f32
    %114 = vector.broadcast %cst_47 : f32 to vector<16x1xf32>
    %115 = arith.addf %111, %114 : vector<16x1xf32>
    %116 = math.rsqrt %115 : vector<16x1xf32>
    %117 = vector.broadcast %116 : vector<16x1xf32> to vector<16x32xf32>
    %118 = arith.mulf %113, %117 : vector<16x32xf32>
    %119 = vector.broadcast %99 : vector<1x32xf32> to vector<16x32xf32>
    %120 = arith.mulf %118, %119 : vector<16x32xf32>
    %121 = vector.broadcast %100 : vector<1x32xf32> to vector<16x32xf32>
    %122 = arith.addf %120, %121 : vector<16x32xf32>
    %c472 = arith.constant 472 : index
    %c0_48 = arith.constant 0 : index
    %123 = vector.load %arg3[%c472, %c0_48] : memref<936x64xf32, #tpu.memory_space<vmem>>, vector<32x64xf32>
    %cst_49 = arith.constant dense<0.000000e+00> : vector<16x64xf32>
    %124 = tpu.matmul %122, %123, %cst_49 {dimension_numbers = #tpu.dot_dimension_numbers<[1], [0], [0], [1], [0, 0, 1, 1], [], []>} : vector<16x32xf32>, vector<32x64xf32>, vector<16x64xf32> -> vector<16x64xf32>
    %c504 = arith.constant 504 : index
    %c0_50 = arith.constant 0 : index
    %125 = vector.load %arg3[%c504, %c0_50] : memref<936x64xf32, #tpu.memory_space<vmem>>, vector<1x64xf32>
    %126 = vector.broadcast %125 : vector<1x64xf32> to vector<16x64xf32>
    %127 = arith.addf %124, %126 : vector<16x64xf32>
    %cst_51 = arith.constant 0.707106769 : f32
    %128 = vector.broadcast %cst_51 : f32 to vector<16x64xf32>
    %129 = arith.mulf %127, %128 : vector<16x64xf32>
    %130 = math.absf %129 : vector<16x64xf32>
    %cst_52 = arith.constant 0.327591091 : f32
    %131 = vector.broadcast %cst_52 : f32 to vector<16x64xf32>
    %132 = arith.mulf %131, %130 : vector<16x64xf32>
    %cst_53 = arith.constant 1.000000e+00 : f32
    %133 = vector.broadcast %cst_53 : f32 to vector<16x64xf32>
    %134 = arith.addf %133, %132 : vector<16x64xf32>
    %cst_54 = arith.constant 1.000000e+00 : f32
    %135 = vector.broadcast %cst_54 : f32 to vector<16x64xf32>
    %136 = arith.divf %135, %134 : vector<16x64xf32>
    %cst_55 = arith.constant 1.06140542 : f32
    %137 = vector.broadcast %cst_55 : f32 to vector<16x64xf32>
    %138 = arith.mulf %136, %137 : vector<16x64xf32>
    %cst_56 = arith.constant -1.45315206 : f32
    %139 = vector.broadcast %cst_56 : f32 to vector<16x64xf32>
    %140 = arith.addf %139, %138 : vector<16x64xf32>
    %141 = arith.mulf %136, %140 : vector<16x64xf32>
    %cst_57 = arith.constant 1.42141378 : f32
    %142 = vector.broadcast %cst_57 : f32 to vector<16x64xf32>
    %143 = arith.addf %142, %141 : vector<16x64xf32>
    %144 = arith.mulf %136, %143 : vector<16x64xf32>
    %cst_58 = arith.constant -0.284496725 : f32
    %145 = vector.broadcast %cst_58 : f32 to vector<16x64xf32>
    %146 = arith.addf %145, %144 : vector<16x64xf32>
    %147 = arith.mulf %136, %146 : vector<16x64xf32>
    %cst_59 = arith.constant 0.254829586 : f32
    %148 = vector.broadcast %cst_59 : f32 to vector<16x64xf32>
    %149 = arith.addf %148, %147 : vector<16x64xf32>
    %150 = arith.mulf %136, %149 : vector<16x64xf32>
    %cst_60 = arith.constant 0.000000e+00 : f32
    %151 = vector.broadcast %cst_60 : f32 to vector<16x64xf32>
    %152 = arith.subf %151, %130 : vector<16x64xf32>
    %153 = arith.mulf %152, %130 : vector<16x64xf32>
    %154 = math.exp %153 : vector<16x64xf32>
    %155 = arith.mulf %150, %154 : vector<16x64xf32>
    %cst_61 = arith.constant 1.000000e+00 : f32
    %156 = vector.broadcast %cst_61 : f32 to vector<16x64xf32>
    %157 = arith.subf %156, %155 : vector<16x64xf32>
    %cst_62 = arith.constant 0.000000e+00 : f32
    %158 = vector.broadcast %cst_62 : f32 to vector<16x64xf32>
    %159 = arith.cmpf oge, %129, %158 : vector<16x64xf32>
    %cst_63 = arith.constant 0.000000e+00 : f32
    %160 = vector.broadcast %cst_63 : f32 to vector<16x64xf32>
    %161 = arith.subf %160, %157 : vector<16x64xf32>
    %162 = arith.select %159, %157, %161 : vector<16x64xi1>, vector<16x64xf32>
    %cst_64 = arith.constant 5.000000e-01 : f32
    %163 = vector.broadcast %cst_64 : f32 to vector<16x64xf32>
    %164 = arith.mulf %163, %127 : vector<16x64xf32>
    %cst_65 = arith.constant 1.000000e+00 : f32
    %165 = vector.broadcast %cst_65 : f32 to vector<16x64xf32>
    %166 = arith.addf %165, %162 : vector<16x64xf32>
    %167 = arith.mulf %164, %166 : vector<16x64xf32>
    %c512 = arith.constant 512 : index
    %c0_66 = arith.constant 0 : index
    %168 = vector.load %arg3[%c512, %c0_66] : memref<936x64xf32, #tpu.memory_space<vmem>>, vector<64x32xf32>
    %cst_67 = arith.constant dense<0.000000e+00> : vector<16x32xf32>
    %169 = tpu.matmul %167, %168, %cst_67 {dimension_numbers = #tpu.dot_dimension_numbers<[1], [0], [0], [1], [0, 0, 1, 1], [], []>} : vector<16x64xf32>, vector<64x32xf32>, vector<16x32xf32> -> vector<16x32xf32>
    %c576 = arith.constant 576 : index
    %c0_68 = arith.constant 0 : index
    %170 = vector.load %arg3[%c576, %c0_68] : memref<936x64xf32, #tpu.memory_space<vmem>>, vector<1x32xf32>
    %171 = vector.broadcast %170 : vector<1x32xf32> to vector<16x32xf32>
    %172 = arith.addf %169, %171 : vector<16x32xf32>
    %173 = arith.addf %172, %122 : vector<16x32xf32>
    %c584 = arith.constant 584 : index
    %c0_69 = arith.constant 0 : index
    %174 = vector.load %arg3[%c584, %c0_69] : memref<936x64xf32, #tpu.memory_space<vmem>>, vector<1x32xf32>
    %c592 = arith.constant 592 : index
    %c0_70 = arith.constant 0 : index
    %175 = vector.load %arg3[%c592, %c0_70] : memref<936x64xf32, #tpu.memory_space<vmem>>, vector<1x32xf32>
    %cst_71 = arith.constant dense<0.000000e+00> : vector<16xf32>
    %176 = vector.multi_reduction <add>, %173, %cst_71 [1] : vector<16x32xf32> to vector<16xf32>
    %177 = vector.shape_cast %176 : vector<16xf32> to vector<16x1xf32>
    %cst_72 = arith.constant 3.200000e+01 : f32
    %178 = vector.broadcast %cst_72 : f32 to vector<16x1xf32>
    %179 = arith.divf %177, %178 : vector<16x1xf32>
    %180 = vector.broadcast %179 : vector<16x1xf32> to vector<16x32xf32>
    %181 = arith.subf %173, %180 : vector<16x32xf32>
    %182 = arith.mulf %181, %181 : vector<16x32xf32>
    %cst_73 = arith.constant dense<0.000000e+00> : vector<16xf32>
    %183 = vector.multi_reduction <add>, %182, %cst_73 [1] : vector<16x32xf32> to vector<16xf32>
    %184 = vector.shape_cast %183 : vector<16xf32> to vector<16x1xf32>
    %cst_74 = arith.constant 3.200000e+01 : f32
    %185 = vector.broadcast %cst_74 : f32 to vector<16x1xf32>
    %186 = arith.divf %184, %185 : vector<16x1xf32>
    %187 = vector.broadcast %179 : vector<16x1xf32> to vector<16x32xf32>
    %188 = arith.subf %173, %187 : vector<16x32xf32>
    %cst_75 = arith.constant 9.99999996E-13 : f32
    %189 = vector.broadcast %cst_75 : f32 to vector<16x1xf32>
    %190 = arith.addf %186, %189 : vector<16x1xf32>
    %191 = math.rsqrt %190 : vector<16x1xf32>
    %192 = vector.broadcast %191 : vector<16x1xf32> to vector<16x32xf32>
    %193 = arith.mulf %188, %192 : vector<16x32xf32>
    %194 = vector.broadcast %174 : vector<1x32xf32> to vector<16x32xf32>
    %195 = arith.mulf %193, %194 : vector<16x32xf32>
    %196 = vector.broadcast %175 : vector<1x32xf32> to vector<16x32xf32>
    %197 = arith.addf %195, %196 : vector<16x32xf32>
    %c600 = arith.constant 600 : index
    %c0_76 = arith.constant 0 : index
    %198 = vector.load %arg3[%c600, %c0_76] : memref<936x64xf32, #tpu.memory_space<vmem>>, vector<32x16xf32>
    %cst_77 = arith.constant dense<0.000000e+00> : vector<16x16xf32>
    %199 = tpu.matmul %197, %198, %cst_77 {dimension_numbers = #tpu.dot_dimension_numbers<[1], [0], [0], [1], [0, 0, 1, 1], [], []>} : vector<16x32xf32>, vector<32x16xf32>, vector<16x16xf32> -> vector<16x16xf32>
    %c696 = arith.constant 696 : index
    %c0_78 = arith.constant 0 : index
    %200 = vector.load %arg3[%c696, %c0_78] : memref<936x64xf32, #tpu.memory_space<vmem>>, vector<1x16xf32>
    %201 = vector.broadcast %200 : vector<1x16xf32> to vector<16x16xf32>
    %202 = arith.addf %199, %201 : vector<16x16xf32>
    %c632 = arith.constant 632 : index
    %c0_79 = arith.constant 0 : index
    %203 = vector.load %arg3[%c632, %c0_79] : memref<936x64xf32, #tpu.memory_space<vmem>>, vector<32x16xf32>
    %cst_80 = arith.constant dense<0.000000e+00> : vector<16x16xf32>
    %204 = tpu.matmul %197, %203, %cst_80 {dimension_numbers = #tpu.dot_dimension_numbers<[1], [0], [0], [1], [0, 0, 1, 1], [], []>} : vector<16x32xf32>, vector<32x16xf32>, vector<16x16xf32> -> vector<16x16xf32>
    %c704 = arith.constant 704 : index
    %c0_81 = arith.constant 0 : index
    %205 = vector.load %arg3[%c704, %c0_81] : memref<936x64xf32, #tpu.memory_space<vmem>>, vector<1x16xf32>
    %206 = vector.broadcast %205 : vector<1x16xf32> to vector<16x16xf32>
    %207 = arith.addf %204, %206 : vector<16x16xf32>
    %c664 = arith.constant 664 : index
    %c0_82 = arith.constant 0 : index
    %208 = vector.load %arg3[%c664, %c0_82] : memref<936x64xf32, #tpu.memory_space<vmem>>, vector<32x16xf32>
    %cst_83 = arith.constant dense<0.000000e+00> : vector<16x16xf32>
    %209 = tpu.matmul %197, %208, %cst_83 {dimension_numbers = #tpu.dot_dimension_numbers<[1], [0], [0], [1], [0, 0, 1, 1], [], []>} : vector<16x32xf32>, vector<32x16xf32>, vector<16x16xf32> -> vector<16x16xf32>
    %c712 = arith.constant 712 : index
    %c0_84 = arith.constant 0 : index
    %210 = vector.load %arg3[%c712, %c0_84] : memref<936x64xf32, #tpu.memory_space<vmem>>, vector<1x16xf32>
    %211 = vector.broadcast %210 : vector<1x16xf32> to vector<16x16xf32>
    %212 = arith.addf %209, %211 : vector<16x16xf32>
    %213 = vector.shape_cast %202 : vector<16x16xf32> to vector<2x8x16xf32>
    %214 = vector.shape_cast %207 : vector<16x16xf32> to vector<2x8x16xf32>
    %215 = vector.shape_cast %212 : vector<16x16xf32> to vector<2x8x16xf32>
    "tpu.trace_start"() <{level = 10 : i32, message = "bqd,bkd->bqk"}> : () -> ()
    %cst_85 = arith.constant dense<0.000000e+00> : vector<2x8x8xf32>
    %216 = tpu.matmul %213, %214, %cst_85 {dimension_numbers = #tpu.dot_dimension_numbers<[2], [2], [1], [1], [0, 0, 0, 1, 1, 1], [0], [0]>} : vector<2x8x16xf32>, vector<2x8x16xf32>, vector<2x8x8xf32> -> vector<2x8x8xf32>
    "tpu.trace_stop"() : () -> ()
    %217 = vector.broadcast %25 : vector<2x1x8xf32> to vector<2x8x8xf32>
    %218 = arith.addf %216, %217 : vector<2x8x8xf32>
    %cst_86 = arith.constant dense<0xFF800000> : vector<2x8xf32>
    %219 = vector.multi_reduction <maximumf>, %218, %cst_86 [2] : vector<2x8x8xf32> to vector<2x8xf32>
    %220 = vector.shape_cast %219 : vector<2x8xf32> to vector<2x8x1xf32>
    %221 = vector.broadcast %220 : vector<2x8x1xf32> to vector<2x8x8xf32>
    %222 = arith.subf %218, %221 : vector<2x8x8xf32>
    %223 = math.exp %222 : vector<2x8x8xf32>
    %cst_87 = arith.constant dense<0.000000e+00> : vector<2x8xf32>
    %224 = vector.multi_reduction <add>, %223, %cst_87 [2] : vector<2x8x8xf32> to vector<2x8xf32>
    %225 = vector.shape_cast %224 : vector<2x8xf32> to vector<2x8x1xf32>
    %226 = vector.broadcast %225 : vector<2x8x1xf32> to vector<2x8x8xf32>
    %227 = arith.divf %223, %226 : vector<2x8x8xf32>
    "tpu.trace_start"() <{level = 10 : i32, message = "bqk,bkd->bqd"}> : () -> ()
    %cst_88 = arith.constant dense<0.000000e+00> : vector<2x8x16xf32>
    %228 = tpu.matmul %227, %215, %cst_88 {dimension_numbers = #tpu.dot_dimension_numbers<[2], [1], [1], [2], [0, 0, 0, 1, 1, 2], [0], [0]>} : vector<2x8x8xf32>, vector<2x8x16xf32>, vector<2x8x16xf32> -> vector<2x8x16xf32>
    "tpu.trace_stop"() : () -> ()
    %229 = vector.shape_cast %228 : vector<2x8x16xf32> to vector<16x16xf32>
    %c720 = arith.constant 720 : index
    %c0_89 = arith.constant 0 : index
    %230 = vector.load %arg3[%c720, %c0_89] : memref<936x64xf32, #tpu.memory_space<vmem>>, vector<16x32xf32>
    %cst_90 = arith.constant dense<0.000000e+00> : vector<16x32xf32>
    %231 = tpu.matmul %229, %230, %cst_90 {dimension_numbers = #tpu.dot_dimension_numbers<[1], [0], [0], [1], [0, 0, 1, 1], [], []>} : vector<16x16xf32>, vector<16x32xf32>, vector<16x32xf32> -> vector<16x32xf32>
    %c736 = arith.constant 736 : index
    %c0_91 = arith.constant 0 : index
    %232 = vector.load %arg3[%c736, %c0_91] : memref<936x64xf32, #tpu.memory_space<vmem>>, vector<32x16xf32>
    %cst_92 = arith.constant dense<0.000000e+00> : vector<16x16xf32>
    %233 = tpu.matmul %197, %232, %cst_92 {dimension_numbers = #tpu.dot_dimension_numbers<[1], [0], [0], [1], [0, 0, 1, 1], [], []>} : vector<16x32xf32>, vector<32x16xf32>, vector<16x16xf32> -> vector<16x16xf32>
    %c832 = arith.constant 832 : index
    %c0_93 = arith.constant 0 : index
    %234 = vector.load %arg3[%c832, %c0_93] : memref<936x64xf32, #tpu.memory_space<vmem>>, vector<1x16xf32>
    %235 = vector.broadcast %234 : vector<1x16xf32> to vector<16x16xf32>
    %236 = arith.addf %233, %235 : vector<16x16xf32>
    %c768 = arith.constant 768 : index
    %c0_94 = arith.constant 0 : index
    %237 = vector.load %arg3[%c768, %c0_94] : memref<936x64xf32, #tpu.memory_space<vmem>>, vector<32x16xf32>
    %cst_95 = arith.constant dense<0.000000e+00> : vector<16x16xf32>
    %238 = tpu.matmul %197, %237, %cst_95 {dimension_numbers = #tpu.dot_dimension_numbers<[1], [0], [0], [1], [0, 0, 1, 1], [], []>} : vector<16x32xf32>, vector<32x16xf32>, vector<16x16xf32> -> vector<16x16xf32>
    %c840 = arith.constant 840 : index
    %c0_96 = arith.constant 0 : index
    %239 = vector.load %arg3[%c840, %c0_96] : memref<936x64xf32, #tpu.memory_space<vmem>>, vector<1x16xf32>
    %240 = vector.broadcast %239 : vector<1x16xf32> to vector<16x16xf32>
    %241 = arith.addf %238, %240 : vector<16x16xf32>
    %c800 = arith.constant 800 : index
    %c0_97 = arith.constant 0 : index
    %242 = vector.load %arg3[%c800, %c0_97] : memref<936x64xf32, #tpu.memory_space<vmem>>, vector<32x16xf32>
    %cst_98 = arith.constant dense<0.000000e+00> : vector<16x16xf32>
    %243 = tpu.matmul %197, %242, %cst_98 {dimension_numbers = #tpu.dot_dimension_numbers<[1], [0], [0], [1], [0, 0, 1, 1], [], []>} : vector<16x32xf32>, vector<32x16xf32>, vector<16x16xf32> -> vector<16x16xf32>
    %c848 = arith.constant 848 : index
    %c0_99 = arith.constant 0 : index
    %244 = vector.load %arg3[%c848, %c0_99] : memref<936x64xf32, #tpu.memory_space<vmem>>, vector<1x16xf32>
    %245 = vector.broadcast %244 : vector<1x16xf32> to vector<16x16xf32>
    %246 = arith.addf %243, %245 : vector<16x16xf32>
    %247 = vector.shape_cast %236 : vector<16x16xf32> to vector<2x8x16xf32>
    %248 = vector.shape_cast %241 : vector<16x16xf32> to vector<2x8x16xf32>
    %249 = vector.shape_cast %246 : vector<16x16xf32> to vector<2x8x16xf32>
    "tpu.trace_start"() <{level = 10 : i32, message = "bqd,bkd->bqk"}> : () -> ()
    %cst_100 = arith.constant dense<0.000000e+00> : vector<2x8x8xf32>
    %250 = tpu.matmul %247, %248, %cst_100 {dimension_numbers = #tpu.dot_dimension_numbers<[2], [2], [1], [1], [0, 0, 0, 1, 1, 1], [0], [0]>} : vector<2x8x16xf32>, vector<2x8x16xf32>, vector<2x8x8xf32> -> vector<2x8x8xf32>
    "tpu.trace_stop"() : () -> ()
    %251 = vector.broadcast %25 : vector<2x1x8xf32> to vector<2x8x8xf32>
    %252 = arith.addf %250, %251 : vector<2x8x8xf32>
    %cst_101 = arith.constant dense<0xFF800000> : vector<2x8xf32>
    %253 = vector.multi_reduction <maximumf>, %252, %cst_101 [2] : vector<2x8x8xf32> to vector<2x8xf32>
    %254 = vector.shape_cast %253 : vector<2x8xf32> to vector<2x8x1xf32>
    %255 = vector.broadcast %254 : vector<2x8x1xf32> to vector<2x8x8xf32>
    %256 = arith.subf %252, %255 : vector<2x8x8xf32>
    %257 = math.exp %256 : vector<2x8x8xf32>
    %cst_102 = arith.constant dense<0.000000e+00> : vector<2x8xf32>
    %258 = vector.multi_reduction <add>, %257, %cst_102 [2] : vector<2x8x8xf32> to vector<2x8xf32>
    %259 = vector.shape_cast %258 : vector<2x8xf32> to vector<2x8x1xf32>
    %260 = vector.broadcast %259 : vector<2x8x1xf32> to vector<2x8x8xf32>
    %261 = arith.divf %257, %260 : vector<2x8x8xf32>
    "tpu.trace_start"() <{level = 10 : i32, message = "bqk,bkd->bqd"}> : () -> ()
    %cst_103 = arith.constant dense<0.000000e+00> : vector<2x8x16xf32>
    %262 = tpu.matmul %261, %249, %cst_103 {dimension_numbers = #tpu.dot_dimension_numbers<[2], [1], [1], [2], [0, 0, 0, 1, 1, 2], [0], [0]>} : vector<2x8x8xf32>, vector<2x8x16xf32>, vector<2x8x16xf32> -> vector<2x8x16xf32>
    "tpu.trace_stop"() : () -> ()
    %263 = vector.shape_cast %262 : vector<2x8x16xf32> to vector<16x16xf32>
    %c856 = arith.constant 856 : index
    %c0_104 = arith.constant 0 : index
    %264 = vector.load %arg3[%c856, %c0_104] : memref<936x64xf32, #tpu.memory_space<vmem>>, vector<16x32xf32>
    %cst_105 = arith.constant dense<0.000000e+00> : vector<16x32xf32>
    %265 = tpu.matmul %263, %264, %cst_105 {dimension_numbers = #tpu.dot_dimension_numbers<[1], [0], [0], [1], [0, 0, 1, 1], [], []>} : vector<16x16xf32>, vector<16x32xf32>, vector<16x32xf32> -> vector<16x32xf32>
    %266 = arith.addf %231, %265 : vector<16x32xf32>
    %c872 = arith.constant 872 : index
    %c0_106 = arith.constant 0 : index
    %267 = vector.load %arg3[%c872, %c0_106] : memref<936x64xf32, #tpu.memory_space<vmem>>, vector<1x32xf32>
    %268 = vector.broadcast %267 : vector<1x32xf32> to vector<16x32xf32>
    %269 = arith.addf %266, %268 : vector<16x32xf32>
    %270 = arith.addf %269, %197 : vector<16x32xf32>
    %c880 = arith.constant 880 : index
    %c0_107 = arith.constant 0 : index
    %271 = vector.load %arg3[%c880, %c0_107] : memref<936x64xf32, #tpu.memory_space<vmem>>, vector<1x32xf32>
    %c888 = arith.constant 888 : index
    %c0_108 = arith.constant 0 : index
    %272 = vector.load %arg3[%c888, %c0_108] : memref<936x64xf32, #tpu.memory_space<vmem>>, vector<1x32xf32>
    %cst_109 = arith.constant dense<0.000000e+00> : vector<16xf32>
    %273 = vector.multi_reduction <add>, %270, %cst_109 [1] : vector<16x32xf32> to vector<16xf32>
    %274 = vector.shape_cast %273 : vector<16xf32> to vector<16x1xf32>
    %cst_110 = arith.constant 3.200000e+01 : f32
    %275 = vector.broadcast %cst_110 : f32 to vector<16x1xf32>
    %276 = arith.divf %274, %275 : vector<16x1xf32>
    %277 = vector.broadcast %276 : vector<16x1xf32> to vector<16x32xf32>
    %278 = arith.subf %270, %277 : vector<16x32xf32>
    %279 = arith.mulf %278, %278 : vector<16x32xf32>
    %cst_111 = arith.constant dense<0.000000e+00> : vector<16xf32>
    %280 = vector.multi_reduction <add>, %279, %cst_111 [1] : vector<16x32xf32> to vector<16xf32>
    %281 = vector.shape_cast %280 : vector<16xf32> to vector<16x1xf32>
    %cst_112 = arith.constant 3.200000e+01 : f32
    %282 = vector.broadcast %cst_112 : f32 to vector<16x1xf32>
    %283 = arith.divf %281, %282 : vector<16x1xf32>
    %284 = vector.broadcast %276 : vector<16x1xf32> to vector<16x32xf32>
    %285 = arith.subf %270, %284 : vector<16x32xf32>
    %cst_113 = arith.constant 9.99999996E-13 : f32
    %286 = vector.broadcast %cst_113 : f32 to vector<16x1xf32>
    %287 = arith.addf %283, %286 : vector<16x1xf32>
    %288 = math.rsqrt %287 : vector<16x1xf32>
    %289 = vector.broadcast %288 : vector<16x1xf32> to vector<16x32xf32>
    %290 = arith.mulf %285, %289 : vector<16x32xf32>
    %291 = vector.broadcast %271 : vector<1x32xf32> to vector<16x32xf32>
    %292 = arith.mulf %290, %291 : vector<16x32xf32>
    %293 = vector.broadcast %272 : vector<1x32xf32> to vector<16x32xf32>
    %294 = arith.addf %292, %293 : vector<16x32xf32>
    %c896 = arith.constant 896 : index
    %c0_114 = arith.constant 0 : index
    %295 = vector.load %arg3[%c896, %c0_114] : memref<936x64xf32, #tpu.memory_space<vmem>>, vector<32x64xf32>
    %cst_115 = arith.constant dense<0.000000e+00> : vector<16x64xf32>
    %296 = tpu.matmul %294, %295, %cst_115 {dimension_numbers = #tpu.dot_dimension_numbers<[1], [0], [0], [1], [0, 0, 1, 1], [], []>} : vector<16x32xf32>, vector<32x64xf32>, vector<16x64xf32> -> vector<16x64xf32>
    %c928 = arith.constant 928 : index
    %c0_116 = arith.constant 0 : index
    %297 = vector.load %arg3[%c928, %c0_116] : memref<936x64xf32, #tpu.memory_space<vmem>>, vector<1x64xf32>
    %298 = vector.broadcast %297 : vector<1x64xf32> to vector<16x64xf32>
    %299 = arith.addf %296, %298 : vector<16x64xf32>
    %300 = math.roundeven %299 : vector<16x64xf32>
    %cst_117 = arith.constant -1.280000e+02 : f32
    %cst_118 = arith.constant 1.270000e+02 : f32
    %301 = vector.broadcast %cst_117 : f32 to vector<16x64xf32>
    %302 = arith.maximumf %301, %300 : vector<16x64xf32>
    %303 = vector.broadcast %cst_118 : f32 to vector<16x64xf32>
    %304 = arith.minimumf %303, %302 : vector<16x64xf32>
    %305 = arith.fptosi %304 : vector<16x64xf32> to vector<16x64xi8>
    %c0_119 = arith.constant 0 : index
    %c0_120 = arith.constant 0 : index
    %306 = vector.load %arg4[%c0_119, %c0_120] : memref<16x64xi8, #tpu.memory_space<vmem>>, vector<16x64xi8>
    tpu.vector_store %arg4[%c0_119, %c0_120], %305 {strides = array<i32>} : memref<16x64xi8, #tpu.memory_space<vmem>>, vector<16x64xi8>,
    return
  }
  func.func @transform_0(%arg0: i32) -> (i32, i32) {
    %c0_i32 = arith.constant 0 : i32
    %c0_i32_0 = arith.constant 0 : i32
    %c0_i32_1 = arith.constant 0 : i32
    return %c0_i32, %c0_i32_0 : i32, i32
  }
  func.func @transform_1(%arg0: i32) -> (i32, i32, i32) {
    %c0_i32 = arith.constant 0 : i32
    %c0_i32_0 = arith.constant 0 : i32
    %c0_i32_1 = arith.constant 0 : i32
    %c0_i32_2 = arith.constant 0 : i32
    return %c0_i32, %c0_i32_0, %c0_i32_1 : i32, i32, i32
  }
  func.func @transform_2(%arg0: i32) -> (i32, i32) {
    %c0_i32 = arith.constant 0 : i32
    %c0_i32_0 = arith.constant 0 : i32
    %c0_i32_1 = arith.constant 0 : i32
    return %c0_i32, %c0_i32_0 : i32, i32
  }
  func.func @transform_3(%arg0: i32) -> (i32, i32) {
    %c0_i32 = arith.constant 0 : i32
    %c0_i32_0 = arith.constant 0 : i32
    %c0_i32_1 = arith.constant 0 : i32
    return %c0_i32, %c0_i32_0 : i32, i32
  }
}

</mosaic_0001>

<bundles_post_ra>
// kernel: midibert_front_ffn_quant.1
= control target key start
LH: loop header
LB: loop body
LE: loop exit
PB: predicated region body
PF: predicated region fallthrough
CT: control target
= control target key end

     0   :  { %v4368_v2 = vmov 0   ;;  %v4369_v6 = vmov 0.0|0.0   ;;  %s5050_s0 = inlined_call_operand.vmem [shape: s32[64,1], index: 0, kind: input, shape index: {}]   ;;  %s5051_s1 = inlined_call_operand.vmem [shape: f32[2,1,8], index: 1, kind: input, shape index: {}]   ;;  %s5052_s2 = inlined_call_operand.vmem [shape: f32[936,64], index: 2, kind: input, shape index: {}]   ;;  %s5053_s3 = inlined_call_operand.hbm [shape: s8[16,64], index: 3, kind: output, shape index: {}]  }
   0x1   :  { %v17_v0 = vld [vmem:[%s5050_s0 + $0x10] sm:$0xff]  ;;  %v15_v1 = vld [vmem:[%s5050_s0] sm:$0xff]  ;;  %4291 = vset.pattern.permute.xlu1 %v4368_v2  ;;  %4290 = vset.pattern.permute.xlu0 %v4368_v2  ;;  %v18_v4 = vld [vmem:[%s5050_s0 + $0x18] sm:$0xff] }
   0x2   :  { %33 = vperm.xlu1 %4291, %v17_v0   ;;  %27 = vperm.xlu0 %4290, %v15_v1   ;;  %v98_v3 = vld [vmem:[%s5052_s2] sm:$0xff]  ;;  %v16_v5 = vld [vmem:[%s5050_s0 + $0x8] sm:$0xff]  ;;  %v100_v9 = vld [vmem:[%s5052_s2 + $0x10] sm:$0xff] }
   0x3   :  { %4083 = vmatprep.subr.bf16.mxu0 %v4369_v6  ;;  %v99_v7 = vld [vmem:[%s5052_s2 + $0x8] sm:$0xff]  ;;  %v101_v10 = vld [vmem:[%s5052_s2 + $0x18] sm:$0xff]  ;;  %v19_v12 = vld [vmem:[%s5050_s0 + $0x20] sm:$0xff] }
   0x4   :  { %v4084_v8 = vpack.c.bf16 %v99_v7, %v98_v3  ;;  %v20_v11 = vld [vmem:[%s5050_s0 + $0x28] sm:$0xff]  ;;  %v4087_v13 = vpack.c.bf16 %v101_v10, %v100_v9  ;;  %v102_v14 = vld [vmem:[%s5052_s2 + $0x20] sm:$0xff] }
   0x5   :  { %v103_v15 = vld [vmem:[%s5052_s2 + $0x28] sm:$0xff] }
   0x6   :  { %36 = vperm.xlu1 %4291, %v18_v4   ;;  %30 = vperm.xlu0 %4290, %v16_v5  }
   0x7   :  { %4085 = vmatpush1.bf16.msra.mxu0 %v4084_v8 }
   0x8   :  { %4086 = vmatprep.subr.bf16.mxu0 %v4369_v6 }
   0xa   :  { %42 = vperm.xlu1 %4291, %v20_v11   ;;  %39 = vperm.xlu0 %4290, %v19_v12  }
   0xb   :  { %8 = vsyncpa [#allocation3], 0  ;;  %v22_v16 = vld [vmem:[%s5050_s0 + $0x38] sm:$0xff]  ;;  %v21_v17 = vld [vmem:[%s5050_s0 + $0x30] sm:$0xff]  ;;  %4088 = vmatpush1.bf16.msra.mxu0 %v4087_v13  ;;  %v4090_v18 = vpack.c.bf16 %v103_v15, %v102_v14  ;;  %v23_v43 = vlaneseq  ;;  %vm120_vm0 = vcmask 392192   ;;  %v4370_v48 = vmov 0.0  }
   0xc   :  { %4089 = vmatprep.subr.bf16.mxu0 %v4369_v6  ;;  %v104_v19 = vld [vmem:[%s5052_s2 + $0x30] sm:$0xff]  ;;  %v105_v20 = vld [vmem:[%s5052_s2 + $0x38] sm:$0xff]  ;;  %v106_v22 = vld [vmem:[%s5052_s2 + $0x40] sm:$0xff]  ;;  %v4371_v50 = vmov 1.0   ;;  %s4373_s9 = smov [#allocation2]  }
   0xd   :  { %v4093_v21 = vpack.c.bf16 %v105_v20, %v104_v19  ;;  %v107_v23 = vld [vmem:[%s5052_s2 + $0x48] sm:$0xff]  ;;  %v108_v25 = vld [vmem:[%s5052_s2 + $0x50] sm:$0xff]  ;;  %v109_v26 = vld [vmem:[%s5052_s2 + $0x58] sm:$0xff]  ;;  %v4497_v44 = vand.u32 127, %v23_v43  ;;  %v4524_v0 = vshrl.u32 %v23_v43, 7  ;;  %s3499_s10 = sshll.u32 %s4373_s9, 4  ;;  %s3500_s10 = int_to_ptr.vmem [resolvable:$true] %s3499_s10 }
   0xe   :  { %48 = vperm.xlu1 %4291, %v22_v16   ;;  %45 = vperm.xlu0 %4290, %v21_v17   ;;  %v4096_v24 = vpack.c.bf16 %v107_v23, %v106_v22  ;;  %v4099_v27 = vpack.c.bf16 %v109_v26, %v108_v25  ;;  %v110_v28 = vld [vmem:[%s5052_s2 + $0x60] sm:$0xff]  ;;  %v111_v29 = vld [vmem:[%s5052_s2 + $0x68] sm:$0xff]  ;;  %v112_v31 = vld [vmem:[%s5052_s2 + $0x70] sm:$0xff]  ;;  %p4349_p1 = scmp.lt.s32.totalorder %s3500_s10, %s3500_s10 }
   0xf   :  { %4091 = vmatpush1.bf16.msra.mxu0 %v4090_v18  ;;  %v4102_v30 = vpack.c.bf16 %v111_v29, %v110_v28  ;;  %v113_v32 = vld [vmem:[%s5052_s2 + $0x78] sm:$0xff]  ;;  %v114_v34 = vld [vmem:[%s5052_s2 + $0x80] sm:$0xff]  ;;  %v115_v35 = vld [vmem:[%s5052_s2 + $0x88] sm:$0xff]  ;;  %v25_v45 = vadd.s32 128, %v4497_v44  ;;  %v253_v1 = vmul.u32 4, %v4524_v0  ;;  %v252_v20 = vadd.s32 8, %v4524_v0 }
  0x10   :  { %4092 = vmatprep.subr.bf16.mxu0 %v4369_v6  ;;  %v4105_v33 = vpack.c.bf16 %v113_v32, %v112_v31  ;;  %v4108_v36 = vpack.c.bf16 %v115_v35, %v114_v34  ;;  %v116_v37 = vld [vmem:[%s5052_s2 + $0x90] sm:$0xff]  ;;  %v117_v38 = vld [vmem:[%s5052_s2 + $0x98] sm:$0xff]  ;;  %v118_v40 = vld [vmem:[%s5052_s2 + $0xa0] sm:$0xff] }
  0x11   :  { %v4111_v39 = vpack.c.bf16 %v117_v38, %v116_v37  ;;  %v119_v41 = vld [vmem:[%s5052_s2 + $0xa8] sm:$0xff]  ;;  %v255_v2 = vsub.s32 %v4497_v44, %v253_v1  ;;  %v1118_v4 = vld [vmem:[%s5052_s2 + $0x178] sm:$0xff]  ;;  %v1119_v5 = vld [vmem:[%s5052_s2 + $0x180] sm:$0xff]  ;;  %v254_v23 = vmul.u32 4, %v252_v20 }
  0x12   :  { %v4114_v42 = vpack.c.bf16 %v119_v41, %v118_v40  ;;  %v1120_v7 = vld [vmem:[%s5052_s2 + $0x188] sm:$0xff]  ;;  %v1121_v8 = vld [vmem:[%s5052_s2 + $0x190] sm:$0xff]  ;;  %v356_v31 = vld [vmem:[%s5052_s2 + $0xb8] sm:$0xff] }
  0x13   :  { %4094 = vmatpush1.bf16.msra.mxu0 %v4093_v21  ;;  %v4176_v9 = vpack.c.bf16 %v1121_v8, %v1120_v7  ;;  %v358_v37 = vld [vmem:[%s5052_s2 + $0xc8] sm:$0xff]  ;;  %v446_v40 = vld [vmem:[%s5052_s2 + $0xd0] sm:$0xff]  ;;  %v447_v41 = vld [vmem:[%s5052_s2 + $0xd8] sm:$0xff] }
  0x14   :  { %4095 = vmatprep.subr.bf16.mxu0 %v4369_v6  ;;  %v448_v43 = vld [vmem:[%s5052_s2 + $0xe0] sm:$0xff] }
  0x17   :  { %4097 = vmatpush1.bf16.msra.mxu0 %v4096_v24 }
  0x18   :  { %4098 = vmatprep.subr.bf16.mxu0 %v4369_v6 }
  0x1b   :  { %4100 = vmatpush1.bf16.msra.mxu0 %v4099_v27  ;;  %v256_v27 = vsub.s32 %v4497_v44, %v254_v23 }
  0x1c   :  { %4101 = vmatprep.subr.bf16.mxu0 %v4369_v6 }
  0x1f   :  { %4103 = vmatpush1.bf16.msra.mxu0 %v4102_v30  ;;  %v355_v30 = vld [vmem:[%s5052_s2 + $0xb0] sm:$0xff] }
  0x20   :  { %4104 = vmatprep.subr.bf16.mxu0 %v4369_v6  ;;  %v4132_v35 = vpack.c.bf16 %v356_v31, %v355_v30 }
  0x23   :  { %4106 = vmatpush1.bf16.msra.mxu0 %v4105_v33 }
  0x24   :  { %4107 = vmatprep.subr.bf16.mxu0 %v4369_v6 }
  0x27   :  { %4109 = vmatpush1.bf16.msra.mxu0 %v4108_v36  ;;  %v357_v36 = vld [vmem:[%s5052_s2 + $0xc0] sm:$0xff] }
  0x28   :  { %4110 = vmatprep.subr.bf16.mxu0 %v4369_v6 }
  0x2b   :  { %4112 = vmatpush1.bf16.msra.mxu0 %v4111_v39  ;;  %v4136_v39 = vpack.c.bf16 %v358_v37, %v357_v36  ;;  %v950_v37 = vld [vmem:[%s5052_s2 + $0x138] sm:$0xff] }
  0x2c   :  { %4113 = vmatprep.subr.bf16.mxu0 %v4369_v6  ;;  %v4172_v6 = vpack.c.bf16 %v1119_v5, %v1118_v4 }
  0x2f   :  { %4115 = vmatpush1.bf16.msra.mxu0 %v4114_v42  ;;  %v4140_v42 = vpack.c.bf16 %v447_v41, %v446_v40 }
  0x30   :  { %4173 = vmatprep.subr.bf16.mxu0 %v4172_v6 }
  0x81   :  { %v28_v46 = vpop.permute.xlu0 %27  ;;  %v34_v47 = vpop.permute.xlu1 %33 }
  0x82   :  { %vm51_vm1 = vcmp.eq.s32.totalorder %v28_v46, %v25_v45  ;;  %vm55_vm2 = vcmp.eq.s32.totalorder %v34_v47, %v25_v45  ;;  %vm50_vm3 = vcmp.eq.s32.totalorder %v28_v46, %v4497_v44  ;;  %vm54_vm7 = vcmp.eq.s32.totalorder %v34_v47, %v4497_v44 }
  0x83   :  { %v3511_v49 = vsel %vm51_vm1, 1.0, %v4370_v48  ;;  %v3515_v52 = vsel %vm55_vm2, 1.0, %v4370_v48  ;;  %vm257_vm2 = vcmp.ge.s32.totalorder %v255_v2, 0 }
  0x84   :  { %3526 = vmatprep.mubr.msk.f32.mxu0 %vm120_vm0, %v3511_v49  ;;  %v530_v49 = vld [vmem:[%s5052_s2 + $0xf0] sm:$0xff] }
  0x85   :  { %3527 = vmatmul.mubr.msk.f32.vlgmr.msra.gmra.mrb[0].mxu0 %vm50_vm3, %v4371_v50  ;;  %v31_v51 = vpop.permute.xlu0 %30  ;;  %v37_v54 = vpop.permute.xlu1 %36  ;;  %vm259_vm3 = vcmp.lt.s32.totalorder %v255_v2, 4 }
  0x86   :  { %vm53_vm4 = vcmp.eq.s32.totalorder %v31_v51, %v25_v45  ;;  %vm52_vm5 = vcmp.eq.s32.totalorder %v31_v51, %v4497_v44  ;;  %vm57_vm6 = vcmp.eq.s32.totalorder %v37_v54, %v25_v45  ;;  %vm56_vm9 = vcmp.eq.s32.totalorder %v37_v54, %v4497_v44  ;;  %4175 = vmatpush3.bf16.msra.mxu0 %v4172_v6 }
  0x87   :  { %v3513_v53 = vsel %vm53_vm4, 1.0, %v4370_v48  ;;  %v3517_v56 = vsel %vm57_vm6, 1.0, %v4370_v48  ;;  %vm261_vm4 = vmand %vm257_vm2, %vm259_vm3  ;;  %4177 = vmatprep.subr.bf16.mxu0 %v4176_v9  ;;  %vm260_vm6 = vcmp.lt.s32.totalorder %v256_v27, 4 }
  0x88   :  { %3528 = vmatprep.mubr.msk.f32.mxu0 %vm120_vm0, %v3513_v53  ;;  %v3542_v3 = vsel %vm261_vm4, 1.0, %v4370_v48  ;;  %v533_v53 = vld [vmem:[%s5052_s2 + $0x108] sm:$0xff] }
  0x89   :  { %3529 = vmatmul.mubr.msk.f32.gmra.mrb[2].mxu0 %vm52_vm5, %v4371_v50  ;;  %v40_v55 = vpop.permute.xlu0 %39  ;;  %v43_v57 = vpop.permute.xlu1 %42  ;;  %vm267_vm5 = vcmask 523264  }
  0x8a   :  { %3530 = vmatprep.mubr.msk.f32.mxu0 %vm120_vm0, %v3515_v52  ;;  %vm59_vm8 = vcmp.eq.s32.totalorder %v40_v55, %v25_v45  ;;  %vm61_vm10 = vcmp.eq.s32.totalorder %v43_v57, %v25_v45  ;;  %vm58_vm11 = vcmp.eq.s32.totalorder %v40_v55, %v4497_v44  ;;  %vm60_vm13 = vcmp.eq.s32.totalorder %v43_v57, %v4497_v44  ;;  %v532_v52 = vld [vmem:[%s5052_s2 + $0x100] sm:$0xff] }
  0x8b   :  { %v3519_v58 = vsel %vm59_vm8, 1.0, %v4370_v48  ;;  %v3521_v60 = vsel %vm61_vm10, 1.0, %v4370_v48  ;;  %3799 = vmatprep.mubr.msk.f32.mxu1 %vm267_vm5, %v3542_v3  ;;  %4179 = vmatpush3.bf16.msra.mxu0 %v4176_v9  ;;  %vm364_vm8 = vcmask 261120   ;;  %v4152_v54 = vpack.c.bf16 %v533_v53, %v532_v52  ;;  %v3552_v3 = vld [vmem:[%s5052_s2 + $0x120] ss:$0 sm:$0xff]  ;;  %v1036_v53 = vld [vmem:[%s5052_s2 + $0x168] sm:$0xff] }
  0x8c   :  { %3893 = vmatprep.subr.mxu0 %v4370_v48  ;;  %vm626_vm10 = vcmask 130048   ;;  %v349_v9 = vld [vmem:[%s5051_s1] sm:$0x1] }
  0x8d   :  { %3531 = vmatmul.mubr.msk.f32.gmra.mrb[4].mxu0 %vm54_vm7, %v4371_v50  ;;  %v46_v59 = vpop.permute.xlu0 %45  ;;  %v49_v61 = vpop.permute.xlu1 %48 }
  0x8e   :  { %3532 = vmatprep.mubr.msk.f32.mxu0 %vm120_vm0, %v3517_v56  ;;  %vm63_vm12 = vcmp.eq.s32.totalorder %v46_v59, %v25_v45  ;;  %vm65_vm14 = vcmp.eq.s32.totalorder %v49_v61, %v25_v45  ;;  %vm62_vm15 = vcmp.eq.s32.totalorder %v46_v59, %v4497_v44  ;;  %vm64_vm1 = vcmp.eq.s32.totalorder %v49_v61, %v4497_v44  ;;  %v449_v44 = vld [vmem:[%s5052_s2 + $0xe8] sm:$0xff]  ;;  %v3549_v59 = vld [vmem:[%s5052_s2 + $0x118] ss:$0 sm:$0xff] }
  0x8f   :  { %v3523_v62 = vsel %vm63_vm12, 1.0, %v4370_v48  ;;  %v3525_v63 = vsel %vm65_vm14, 1.0, %v4370_v48  ;;  %v4144_v47 = vpack.c.bf16 %v449_v44, %v448_v43  ;;  %v953_v43 = vld [vmem:[%s5052_s2 + $0x150] sm:$0xff]  ;;  %vm3491_vm14 = vcmask 517120  }
  0x91   :  { %3533 = vmatmul.mubr.msk.f32.gmra.mrb[6].mxu0 %vm56_vm9, %v4371_v50  ;;  %vm4372_vm9 = vmmov 0  }
  0x92   :  { %3534 = vmatprep.mubr.msk.f32.mxu0 %vm120_vm0, %v3519_v58 }
  0x95   :  { %3535 = vmatmul.mubr.msk.f32.gmra.mrb[8].mxu0 %vm58_vm11, %v4371_v50  ;;  %vm779_vm11 = vcmask 64512  }
  0x96   :  { %3536 = vmatprep.mubr.msk.f32.mxu0 %vm120_vm0, %v3521_v60 }
  0x99   :  { %3537 = vmatmul.mubr.msk.f32.gmra.mrb[10].mxu0 %vm60_vm13, %v4371_v50 }
  0x9a   :  { %3538 = vmatprep.mubr.msk.f32.mxu0 %vm120_vm0, %v3523_v62  ;;  %v3546_v62 = vld [vmem:[%s5052_s2 + $0x110] ss:$0 sm:$0xff] }
  0x9d   :  { %3539 = vmatmul.mubr.msk.f32.gmra.mrb[12].mxu0 %vm62_vm15, %v4371_v50 }
  0x9e   :  { %3540 = vmatprep.mubr.msk.f32.mxu0 %vm120_vm0, %v3525_v63  ;;  %vm258_vm0 = vcmp.ge.s32.totalorder %v256_v27, 0 }
  0x9f   :  { %vm262_vm7 = vmand %vm258_vm0, %vm260_vm6 }
  0xa0   :  { %v3543_v38 = vsel %vm262_vm7, 1.0, %v4370_v48 }
  0xa1   :  { %3541 = vmatmul.mubr.msk.f32.gmra.mrb[14].mxu0 %vm64_vm1, %v4371_v50  ;;  %v531_v50 = vld [vmem:[%s5052_s2 + $0xf8] sm:$0xff] }
  0xa2   :  { %v4148_v51 = vpack.c.bf16 %v531_v50, %v530_v49  ;;  %v1034_v50 = vld [vmem:[%s5052_s2 + $0x158] sm:$0xff] }
 0x158   :  { %v211_v10 = vpop.f32.mrb[0].mxu0 }
 0x159   :  { %v213_v11 = vpop.f32.mrb[1].mxu0 }
 0x15a   :  { %v350_v11 = vld [vmem:[%s5051_s1 + $0x1] sm:$0x1] }
 0x15c   :  { %v216_v12 = vpop.f32.mrb[2].mxu0 }
 0x15d   :  { %v4116_v13 = vpack.c.bf16 %v216_v12, %v211_v10  ;;  %v218_v14 = vpop.f32.mrb[3].mxu0  ;;  %v351_v10 = vsub.f32 1.0, %v349_v9 }
 0x15e   :  { %v352_v14 = vsub.f32 1.0, %v350_v11 }
 0x15f   :  { %4117 = vmatprep.subr.bf16.mxu1 %v4116_v13  ;;  %v353_v12 = vmul.f32 -10000.0, %v351_v10 }
 0x160   :  { %v221_v15 = vpop.f32.mrb[4].mxu0  ;;  %4119 = vmatpush3.bf16.msra.mxu1 %v4116_v13  ;;  %v618_v13 = vsub.s32 0, %v4524_v0 }
 0x161   :  { %v223_v16 = vpop.f32.mrb[5].mxu0 }
 0x162   :  { %v354_v16 = vmul.f32 -10000.0, %v352_v14 }
 0x164   :  { %v226_v17 = vpop.f32.mrb[6].mxu0  ;;  %v4642_v20 = vrot.slane %v354_v16, %v618_v13 }
 0x165   :  { %v4120_v18 = vpack.c.bf16 %v226_v17, %v221_v15  ;;  %v228_v19 = vpop.f32.mrb[7].mxu0  ;;  %v4639_v15 = vrot.slane %v353_v12, %v618_v13 }
 0x167   :  { %4121 = vmatprep.subr.bf16.mxu1 %v4120_v18 }
 0x168   :  { %v231_v21 = vpop.f32.mrb[8].mxu0  ;;  %4123 = vmatpush3.bf16.msra.mxu1 %v4120_v18 }
 0x169   :  { %v233_v22 = vpop.f32.mrb[9].mxu0 }
 0x16c   :  { %v236_v24 = vpop.f32.mrb[10].mxu0 }
 0x16d   :  { %v4124_v25 = vpack.c.bf16 %v236_v24, %v231_v21  ;;  %v238_v26 = vpop.f32.mrb[11].mxu0 }
 0x16f   :  { %4125 = vmatprep.subr.bf16.mxu1 %v4124_v25 }
 0x170   :  { %v241_v28 = vpop.f32.mrb[12].mxu0  ;;  %4127 = vmatpush3.bf16.msra.mxu1 %v4124_v25 }
 0x171   :  { %v243_v29 = vpop.f32.mrb[13].mxu0 }
 0x174   :  { %v246_v32 = vpop.f32.mrb[14].mxu0 }
 0x175   :  { %v4128_v33 = vpack.c.bf16 %v246_v32, %v241_v28  ;;  %v248_v34 = vpop.f32.mrb[15].mxu0 }
 0x177   :  { %4129 = vmatprep.subr.bf16.mxu1 %v4128_v33 }
 0x178   :  { %4131 = vmatpush3.bf16.msra.mxu1 %v4128_v33 }
 0x179   :  { %4133 = vmatprep.subr.bf16.mxu1 %v4132_v35 }
 0x17b   :  { %3800 = vmatmul.mubr.msk.f32.vlgmr.msra.gmra.mrb[0].mxu1 %vm267_vm5, %v3543_v38  ;;  %v951_v38 = vld [vmem:[%s5052_s2 + $0x140] sm:$0xff] }
 0x17c   :  { %4135 = vmatpush3.bf16.msra.mxu1 %v4132_v35  ;;  %v4156_v41 = vpack.c.bf16 %v951_v38, %v950_v37  ;;  %v948_v38 = vld [vmem:[%s5052_s2 + $0x128] sm:$0xff] }
 0x17d   :  { %4137 = vmatprep.subr.bf16.mxu1 %v4136_v39 }
 0x180   :  { %4139 = vmatpush3.bf16.msra.mxu1 %v4136_v39 }
 0x181   :  { %4141 = vmatprep.subr.bf16.mxu1 %v4140_v42 }
 0x24e   :  { %v4571_v45 = vpop.f32.mrb[0].mxu1 }
 0x24f   :  { %v4573_v46 = vpop.f32.mrb[1].mxu1 }
 0x250   :  { %3810 = vmatprep.mubr.msk.f32.mxu1 %vm364_vm8, %v4573_v46  ;;  %3885 = vmatprep.mubr.msk.f32.mxu0 %vm364_vm8, %v4573_v46 }
 0x251   :  { %3811 = vmatmul.mubr.msk.f32.vlgmr.msra.gmra.mrb[2].mxu1 %vm364_vm8, %v4571_v45  ;;  %3886 = vmatmul.mubr.msk.f32.vlgmr.msra.gmra.mrb[16].mxu0 %vm364_vm8, %v4571_v45 }
 0x252   :  { %4143 = vmatpush3.bf16.msra.mxu1 %v4140_v42  ;;  %3821 = vmatprep.mubr.msk.f32.mxu1 %vm364_vm8, %v4573_v46  ;;  %v952_v42 = vld [vmem:[%s5052_s2 + $0x148] sm:$0xff] }
 0x253   :  { %4145 = vmatprep.subr.bf16.mxu1 %v4144_v47  ;;  %3895 = vmatprep.mubr.msk.f32.mxu0 %vm4372_vm9, %v4370_v48  ;;  %v4160_v49 = vpack.c.bf16 %v953_v43, %v952_v42 }
 0x256   :  { %4147 = vmatpush3.bf16.msra.mxu1 %v4144_v47 }
 0x257   :  { %4149 = vmatprep.subr.bf16.mxu1 %v4148_v51 }
 0x259   :  { %3822 = vmatmul.mubr.msk.f32.vlgmr.msra.gmra.mrb[4].mxu1 %vm364_vm8, %v4571_v45 }
 0x25a   :  { %4151 = vmatpush3.bf16.msra.mxu1 %v4148_v51  ;;  %3832 = vmatprep.mubr.msk.f32.mxu1 %vm364_vm8, %v4573_v46  ;;  %v1035_v51 = vld [vmem:[%s5052_s2 + $0x160] sm:$0xff] }
 0x25b   :  { %4153 = vmatprep.subr.bf16.mxu1 %v4152_v54  ;;  %v4164_v52 = vpack.c.bf16 %v1035_v51, %v1034_v50 }
 0x25e   :  { %4155 = vmatpush3.bf16.msra.mxu1 %v4152_v54  ;;  %v1037_v54 = vld [vmem:[%s5052_s2 + $0x170] sm:$0xff] }
 0x25f   :  { %3835 = vmatprep.subr.mxu1 %v4370_v48 }
 0x261   :  { %3833 = vmatmul.mubr.msk.f32.vlgmr.msra.gmra.mrb[6].mxu1 %vm364_vm8, %v4571_v45 }
 0x262   :  { %3837 = vmatprep.mubr.msk.f32.mxu1 %vm4372_vm9, %v4370_v48 }
 0x324   :  { %v3812_v55 = vpop.f32.mrb[2].mxu1  ;;  %v4608_v56 = vpop.f32.mrb[16].mxu0 }
 0x325   :  { %v437_v57 = vpop.f32.mrb[3].mxu1  ;;  %v4610_v58 = vpop.f32.mrb[17].mxu0  ;;  %v443_v5 = vadd.f32 %v3812_v55, %v3546_v62  ;;  %v4168_v55 = vpack.c.bf16 %v1037_v54, %v1036_v53 }
 0x326   :  { %v438_v1 = vadd.f32 %v3546_v62, %v437_v57 }
 0x32c   :  { %v3823_v60 = vpop.f32.mrb[4].mxu1 }
 0x32d   :  { %v521_v61 = vpop.f32.mrb[5].mxu1  ;;  %v527_v2 = vadd.f32 %v3823_v60, %v3549_v59 }
 0x32e   :  { %v522_v63 = vadd.f32 %v3549_v59, %v521_v61 }
 0x330   :  { %3836 = vmatpush3.xpose.msk.msra.mxu1 %vm626_vm10, %v522_v63 }
 0x331   :  { %3840 = vmatprep.subr.mxu1 %v4370_v48 }
 0x333   :  { %3838 = vmatmul.mubr.msk.f32.vlgmr.msra.gmra.mrb[8].mxu1 %vm626_vm10, %v438_v1  ;;  %v3564_v1 = vld [vmem:[%s5052_s2 + $0x1a0] ss:$0 sm:$0xff] }
 0x334   :  { %v3834_v4 = vpop.f32.mrb[6].mxu1  ;;  %3841 = vmatpush3.xpose.msk.msra.mxu1 %vm626_vm10, %v527_v2  ;;  %3842 = vmatprep.mubr.msk.f32.mxu1 %vm4372_vm9, %v4370_v48 }
 0x335   :  { %v611_v6 = vadd.f32 %v3834_v4, %v3552_v3  ;;  %v605_v7 = vpop.f32.mrb[7].mxu1  ;;  %3845 = vmatprep.subr.mxu1 %v4370_v48 }
 0x336   :  { %v606_v8 = vadd.f32 %v3552_v3, %v605_v7  ;;  %v3561_v3 = vld [vmem:[%s5052_s2 + $0x198] ss:$0 sm:$0xff] }
 0x337   :  { %3843 = vmatmul.mubr.msk.f32.vlgmr.msra.gmra.mrb[10].mxu1 %vm626_vm10, %v443_v5 }
 0x338   :  { %3846 = vmatpush3.msra.mxu1 %v606_v8  ;;  %3847 = vmatprep.mubr.msk.f32.mxu1 %vm4372_vm9, %v4370_v48 }
 0x339   :  { %3850 = vmatprep.subr.mxu1 %v4370_v48 }
 0x406   :  { %v699_v17 = vpop.f32.mrb[8].mxu1 }
 0x407   :  { %v700_v18 = vadd.f32 %v699_v17, %v4639_v15  ;;  %v3839_v19 = vpop.f32.mrb[9].mxu1 }
 0x409   :  { %v780_v21 = vsel %vm779_vm11, %v700_v18, -inf }
 0x40a   :  { %781 = vmax.xlane.f32.xlu0 %v780_v21  ;;  %v775_v22 = vpop.f32.mrb[10].mxu1 }
 0x40b   :  { %v776_v23 = vadd.f32 %v775_v22, %v4642_v20  ;;  %v3844_v24 = vpop.f32.mrb[11].mxu1 }
 0x40d   :  { %v783_v0 = vsel %vm779_vm11, %v776_v23, -inf }
 0x40e   :  { %784 = vmax.xlane.f32.xlu1 %v783_v0 }
 0x497   :  { %v782_v25 = vpop.xlane.xlu0 %781 }
 0x498   :  { %v786_v26 = vsub.f32 %v700_v18, %v782_v25 }
 0x49a   :  { %v788_v27 = vmul.f32 1.442695, %v786_v26 }
 0x49b   :  { %v785_v28 = vpop.xlane.xlu1 %784 }
 0x49c   :  { %4292 = vpow2.f32 %v788_v27  ;;  %v787_v29 = vsub.f32 %v776_v23, %v785_v28 }
 0x49e   :  { %v790_v30 = vmul.f32 1.442695, %v787_v29  ;;  %v1522_v29 = vld [vmem:[%s5052_s2 + $0x1b0] sm:$0xff] }
 0x4a0   :  { %4294 = vpow2.f32 %v790_v30  ;;  %v1523_v30 = vld [vmem:[%s5052_s2 + $0x1b8] sm:$0xff] }
 0x4a6   :  { %v4293_v31 = vpop.eup %4292 }
 0x4a7   :  { %v792_v32 = vsel %vm779_vm11, %v4293_v31, 0.0 }
 0x4a8   :  { %793 = vadd.xlane.f32.xlu0 %v792_v32 }
 0x4aa   :  { %v4295_v33 = vpop.eup %4294 }
 0x4ab   :  { %v795_v34 = vsel %vm779_vm11, %v4295_v33, 0.0 }
 0x4ac   :  { %796 = vadd.xlane.f32.xlu0 %v795_v34 }
 0x535   :  { %v794_v35 = vpop.xlane.xlu0 %793 }
 0x536   :  { %4296 = vrcp.f32 %v794_v35 }
 0x539   :  { %v797_v36 = vpop.xlane.xlu0 %796 }
 0x53a   :  { %4298 = vrcp.f32 %v797_v36 }
 0x540   :  { %v4297_v39 = vpop.eup %4296 }
 0x541   :  { %v799_v40 = vmul.f32 %v4297_v39, %v4293_v31  ;;  %v4180_v31 = vpack.c.bf16 %v1523_v30, %v1522_v29  ;;  %v949_v39 = vld [vmem:[%s5052_s2 + $0x130] sm:$0xff]  ;;  %v1883_v29 = vld [vmem:[%s5052_s2 + $0x218] sm:$0xff] }
 0x543   :  { %3848 = vmatmul.mubr.msk.f32.vlgmr.msra.gmra.mrb[12].mxu1 %vm779_vm11, %v799_v40  ;;  %v4184_v40 = vpack.c.bf16 %v949_v39, %v948_v38 }
 0x544   :  { %v4299_v44 = vpop.eup %4298  ;;  %3851 = vmatpush3.msra.mxu1 %v611_v6  ;;  %3852 = vmatprep.mubr.msk.f32.mxu1 %vm4372_vm9, %v4370_v48  ;;  %v3567_v6 = vld [vmem:[%s5052_s2 + $0x1a8] ss:$0 sm:$0xff] }
 0x545   :  { %v801_v47 = vmul.f32 %v4299_v44, %v4295_v33  ;;  %4157 = vmatprep.subr.bf16.mxu1 %v4156_v41  ;;  %v1199_v9 = vadd.f32 %v4608_v56, %v3567_v6  ;;  %v1194_v11 = vadd.f32 %v3567_v6, %v4610_v58 }
 0x547   :  { %3853 = vmatmul.mubr.msk.f32.vlgmr.msra.gmra.mrb[14].mxu1 %vm779_vm11, %v801_v47  ;;  %v3580_v47 = vld [vmem:[%s5052_s2 + $0x1c0] ss:$0 sm:$0xff] }
 0x548   :  { %4159 = vmatpush3.bf16.msra.mxu1 %v4156_v41  ;;  %3863 = vmatprep.mubr.msk.f32.mxu1 %vm364_vm8, %v4573_v46 }
 0x549   :  { %4161 = vmatprep.subr.bf16.mxu1 %v4160_v49 }
 0x54c   :  { %4163 = vmatpush3.bf16.msra.mxu1 %v4160_v49 }
 0x54d   :  { %4165 = vmatprep.subr.bf16.mxu1 %v4164_v52 }
 0x54f   :  { %3864 = vmatmul.mubr.msk.f32.vlgmr.msra.gmra.mrb[16].mxu1 %vm364_vm8, %v4571_v45 }
 0x550   :  { %4167 = vmatpush3.bf16.msra.mxu1 %v4164_v52  ;;  %3874 = vmatprep.mubr.msk.f32.mxu1 %vm364_vm8, %v4573_v46 }
 0x551   :  { %4169 = vmatprep.subr.bf16.mxu1 %v4168_v55 }
 0x554   :  { %4171 = vmatpush3.bf16.msra.mxu1 %v4168_v55 }
 0x555   :  { %3888 = vmatprep.subr.mxu1 %v4370_v48 }
 0x557   :  { %3875 = vmatmul.mubr.msk.f32.vlgmr.msra.gmra.mrb[18].mxu1 %vm364_vm8, %v4571_v45 }
 0x558   :  { %3890 = vmatprep.mubr.msk.f32.mxu1 %vm4372_vm9, %v4370_v48 }
 0x616   :  { %v4688_v57 = vpop.f32.mrb[12].mxu1 }
 0x617   :  { %v3849_v59 = vpop.f32.mrb[13].mxu1 }
 0x61a   :  { %v4690_v60 = vpop.f32.mrb[14].mxu1 }
 0x61b   :  { %v3854_v61 = vpop.f32.mrb[15].mxu1 }
 0x622   :  { %v3865_v62 = vpop.f32.mrb[16].mxu1 }
 0x623   :  { %v1025_v63 = vpop.f32.mrb[17].mxu1  ;;  %v1031_v8 = vadd.f32 %v3865_v62, %v3561_v3 }
 0x624   :  { %v1026_v10 = vadd.f32 %v3561_v3, %v1025_v63 }
 0x62a   :  { %v3876_v2 = vpop.f32.mrb[18].mxu1 }
 0x62b   :  { %v1115_v4 = vadd.f32 %v3876_v2, %v3564_v1  ;;  %v1109_v5 = vpop.f32.mrb[19].mxu1 }
 0x62c   :  { %v1110_v7 = vadd.f32 %v3564_v1, %v1109_v5  ;;  %v1737_v5 = vld [vmem:[%s5052_s2 + $0x1e0] sm:$0xff] }
 0x62d   :  { %3894 = vmatpush3.xpose.msk.msra.mxu0 %vm626_vm10, %v1115_v4 }
 0x62e   :  { %3889 = vmatpush3.xpose.msk.msra.mxu1 %vm626_vm10, %v1110_v7  ;;  %3903 = vmatprep.subr.mxu0 %v4370_v48  ;;  %v1738_v7 = vld [vmem:[%s5052_s2 + $0x1e8] sm:$0xff] }
 0x62f   :  { %3898 = vmatprep.subr.mxu1 %v4370_v48 }
 0x630   :  { %3896 = vmatmul.mubr.msk.f32.vlgmr.msra.gmra.mrb[18].mxu0 %vm626_vm10, %v1031_v8  ;;  %v1739_v8 = vld [vmem:[%s5052_s2 + $0x1f0] sm:$0xff] }
 0x631   :  { %3891 = vmatmul.mubr.msk.f32.vlgmr.msra.gmra.mrb[20].mxu1 %vm626_vm10, %v1026_v10  ;;  %3904 = vmatpush3.msra.mxu0 %v1199_v9  ;;  %v4192_v9 = vpack.c.bf16 %v1739_v8, %v1738_v7 }
 0x632   :  { %3899 = vmatpush3.msra.mxu1 %v1194_v11  ;;  %3905 = vmatprep.mubr.msk.f32.mxu0 %vm4372_vm9, %v4370_v48 }
 0x633   :  { %3900 = vmatprep.mubr.msk.f32.mxu1 %vm4372_vm9, %v4370_v48  ;;  %4181 = vmatprep.subr.bf16.mxu1 %v4180_v31 }
 0x703   :  { %v1350_v12 = vpop.f32.mrb[18].mxu0 }
 0x704   :  { %v1351_v56 = vadd.f32 %v1350_v12, %v4642_v20  ;;  %v1274_v13 = vpop.f32.mrb[20].mxu1  ;;  %v3897_v14 = vpop.f32.mrb[19].mxu0 }
 0x705   :  { %v1275_v16 = vadd.f32 %v1274_v13, %v4639_v15  ;;  %v3892_v58 = vpop.f32.mrb[21].mxu1 }
 0x706   :  { %v1357_v17 = vsel %vm779_vm11, %v1351_v56, -inf  ;;  %v3581_v58 = vld [vmem:[%s5052_s2 + $0x1c8] ss:$0 sm:$0xff] }
 0x707   :  { %1358 = vmax.xlane.f32.xlu0 %v1357_v17  ;;  %v1354_v18 = vsel %vm779_vm11, %v1275_v16, -inf }
 0x708   :  { %1355 = vmax.xlane.f32.xlu1 %v1354_v18 }
 0x794   :  { %v1359_v19 = vpop.xlane.xlu0 %1358 }
 0x795   :  { %v1361_v21 = vsub.f32 %v1351_v56, %v1359_v19  ;;  %v1356_v22 = vpop.xlane.xlu1 %1355 }
 0x796   :  { %v1360_v23 = vsub.f32 %v1275_v16, %v1356_v22 }
 0x797   :  { %v1364_v24 = vmul.f32 1.442695, %v1361_v21  ;;  %v3582_v21 = vld [vmem:[%s5052_s2 + $0x1d0] ss:$0 sm:$0xff] }
 0x798   :  { %v1362_v0 = vmul.f32 1.442695, %v1360_v23 }
 0x799   :  { %4300 = vpow2.f32 %v1364_v24 }
 0x79a   :  { %4302 = vpow2.f32 %v1362_v0 }
 0x7a3   :  { %v4301_v25 = vpop.eup %4300 }
 0x7a4   :  { %v4303_v26 = vpop.eup %4302  ;;  %v1369_v27 = vsel %vm779_vm11, %v4301_v25, 0.0 }
 0x7a5   :  { %1370 = vadd.xlane.f32.xlu0 %v1369_v27  ;;  %v1366_v28 = vsel %vm779_vm11, %v4303_v26, 0.0 }
 0x7a6   :  { %1367 = vadd.xlane.f32.xlu1 %v1366_v28  ;;  %v1882_v28 = vld [vmem:[%s5052_s2 + $0x210] sm:$0xff] }
 0x7a7   :  { %v4200_v30 = vpack.c.bf16 %v1883_v29, %v1882_v28 }
 0x832   :  { %v1371_v32 = vpop.xlane.xlu0 %1370 }
 0x833   :  { %4304 = vrcp.f32 %v1371_v32  ;;  %v1368_v33 = vpop.xlane.xlu1 %1367  ;;  %v1885_v32 = vld [vmem:[%s5052_s2 + $0x228] sm:$0xff] }
 0x834   :  { %4306 = vrcp.f32 %v1368_v33 }
 0x83d   :  { %v4305_v34 = vpop.eup %4304 }
 0x83e   :  { %v4307_v35 = vpop.eup %4306  ;;  %v1375_v36 = vmul.f32 %v4305_v34, %v4301_v25  ;;  %v1880_v25 = vld [vmem:[%s5052_s2 + $0x200] sm:$0xff]  ;;  %v1886_v34 = vld [vmem:[%s5052_s2 + $0x230] sm:$0xff] }
 0x83f   :  { %v1373_v37 = vmul.f32 %v4307_v35, %v4303_v26  ;;  %v1881_v26 = vld [vmem:[%s5052_s2 + $0x208] sm:$0xff]  ;;  %v1887_v35 = vld [vmem:[%s5052_s2 + $0x238] sm:$0xff] }
 0x840   :  { %3906 = vmatmul.mubr.msk.f32.vlgmr.msra.gmra.mrb[20].mxu0 %vm779_vm11, %v1375_v36  ;;  %v4196_v27 = vpack.c.bf16 %v1881_v26, %v1880_v25  ;;  %v4208_v36 = vpack.c.bf16 %v1887_v35, %v1886_v34 }
 0x841   :  { %3901 = vmatmul.mubr.msk.f32.vlgmr.msra.gmra.mrb[22].mxu1 %vm779_vm11, %v1373_v37  ;;  %v3583_v37 = vld [vmem:[%s5052_s2 + $0x1f8] ss:$0 sm:$0xff] }
 0x842   :  { %4183 = vmatpush3.bf16.msra.mxu1 %v4180_v31  ;;  %v1884_v31 = vld [vmem:[%s5052_s2 + $0x220] sm:$0xff] }
 0x843   :  { %4185 = vmatprep.subr.bf16.mxu1 %v4184_v40  ;;  %v4204_v33 = vpack.c.bf16 %v1885_v32, %v1884_v31 }
 0x913   :  { %v1518_v41 = vpop.f32.mrb[20].mxu0 }
 0x914   :  { %v1445_v42 = vpop.f32.mrb[22].mxu1  ;;  %v3907_v43 = vpop.f32.mrb[21].mxu0 }
 0x915   :  { %v3902_v44 = vpop.f32.mrb[23].mxu1  ;;  %3912 = vmatprep.mubr.msk.f32.mxu1 %vm626_vm10, %v1445_v42 }
 0x916   :  { %3913 = vmatmul.mubr.msk.f32.vlgmr.msra.gmra.mrb[24].mxu1 %vm626_vm10, %v1518_v41 }
 0x917   :  { %4187 = vmatpush3.bf16.msra.mxu1 %v4184_v40  ;;  %3919 = vmatprep.mubr.msk.f32.mxu1 %vm626_vm10, %v4688_v57 }
 0x918   :  { %4197 = vmatprep.subr.bf16.mxu1 %v4196_v27 }
 0x91e   :  { %3920 = vmatmul.mubr.msk.f32.vlgmr.msra.gmra.mrb[24].mxu1 %vm626_vm10, %v4690_v60 }
 0x91f   :  { %4199 = vmatpush3.bf16.msra.mxu1 %v4196_v27 }
 0x920   :  { %4201 = vmatprep.subr.bf16.mxu1 %v4200_v30 }
 0x923   :  { %4203 = vmatpush3.bf16.msra.mxu1 %v4200_v30 }
 0x924   :  { %4205 = vmatprep.subr.bf16.mxu1 %v4204_v33 }
 0x927   :  { %4207 = vmatpush3.bf16.msra.mxu1 %v4204_v33  ;;  %v3586_v33 = vld [vmem:[%s5052_s2 + $0x240] ss:$0 sm:$0xff] }
 0x928   :  { %4209 = vmatprep.subr.bf16.mxu1 %v4208_v36 }
 0x92b   :  { %4211 = vmatpush3.bf16.msra.mxu1 %v4208_v36 }
 0x9f1   :  { %v3921_v49 = vpop.f32.mrb[24].mxu1 }
 0x9f2   :  { %v1692_v50 = vadd.f32 %v3921_v49, %v3580_v47  ;;  %v1677_v51 = vpop.f32.mrb[25].mxu1 }
 0x9f3   :  { %v1691_v52 = vadd.f32 %v3580_v47, %v1677_v51 }
 0x9f4   :  { %v1694_v53 = vadd.f32 %v4571_v45, %v1692_v50 }
 0x9f5   :  { %v1693_v54 = vadd.f32 %v1691_v52, %v4573_v46  ;;  %v1736_v46 = vld [vmem:[%s5052_s2 + $0x1d8] sm:$0xff] }
 0x9f6   :  { %v1700_v55 = vsel %vm364_vm8, %v1694_v53, 0.0  ;;  %v4188_v6 = vpack.c.bf16 %v1737_v5, %v1736_v46 }
 0x9f7   :  { %1701 = vadd.xlane.f32.xlu0 %v1700_v55  ;;  %v1697_v57 = vsel %vm364_vm8, %v1693_v54, 0.0 }
 0x9f8   :  { %1698 = vadd.xlane.f32.xlu1 %v1697_v57  ;;  %4189 = vmatprep.subr.bf16.mxu0 %v4188_v6 }
 0x9f9   :  { %4191 = vmatpush3.bf16.msra.mxu0 %v4188_v6 }
 0x9fa   :  { %4193 = vmatprep.subr.bf16.mxu0 %v4192_v9 }
 0x9fd   :  { %4195 = vmatpush3.bf16.msra.mxu0 %v4192_v9 }
 0xa84   :  { %v1702_v59 = vpop.xlane.xlu0 %1701 }
 0xa85   :  { %v1705_v60 = vmul.f32 0.03125, %v1702_v59  ;;  %v1699_v61 = vpop.xlane.xlu1 %1698 }
 0xa86   :  { %v1704_v62 = vmul.f32 0.03125, %v1699_v61 }
 0xa87   :  { %v1707_v63 = vsub.f32 %v1694_v53, %v1705_v60 }
 0xa88   :  { %v1706_v1 = vsub.f32 %v1693_v54, %v1704_v62 }
 0xa89   :  { %v1709_v2 = vmul.f32 %v1707_v63, %v1707_v63 }
 0xa8a   :  { %v1708_v3 = vmul.f32 %v1706_v1, %v1706_v1 }
 0xa8b   :  { %v1713_v4 = vsel %vm364_vm8, %v1709_v2, 0.0 }
 0xa8c   :  { %1714 = vadd.xlane.f32.xlu0 %v1713_v4  ;;  %v1710_v45 = vsel %vm364_vm8, %v1708_v3, 0.0 }
 0xa8d   :  { %1711 = vadd.xlane.f32.xlu1 %v1710_v45 }
 0xb19   :  { %v1715_v10 = vpop.xlane.xlu0 %1714 }
 0xb1a   :  { %v1717_v11 = vmul.f32 0.03125, %v1715_v10  ;;  %v1712_v12 = vpop.xlane.xlu1 %1711 }
 0xb1b   :  { %v1716_v56 = vmul.f32 0.03125, %v1712_v12 }
 0xb1c   :  { %v1719_v13 = vadd.f32 1e-12, %v1717_v11 }
 0xb1d   :  { %v1718_v14 = vadd.f32 1e-12, %v1716_v56 }
 0xb1e   :  { %4308 = vrsqrt.f32 %v1719_v13 }
 0xb1f   :  { %4310 = vrsqrt.f32 %v1718_v14 }
 0xb28   :  { %v4309_v16 = vpop.eup %4308 }
 0xb29   :  { %v4311_v17 = vpop.eup %4310  ;;  %v1723_v18 = vmul.f32 %v4309_v16, %v1707_v63 }
 0xb2a   :  { %v1722_v19 = vmul.f32 %v4311_v17, %v1706_v1 }
 0xb2b   :  { %v1729_v22 = vmul.f32 %v3581_v58, %v1723_v18 }
 0xb2c   :  { %v1728_v23 = vmul.f32 %v3581_v58, %v1722_v19 }
 0xb2d   :  { %v4768_v0 = vadd.f32 %v3582_v21, %v1729_v22 }
 0xb2e   :  { %v4766_v24 = vadd.f32 %v3582_v21, %v1728_v23 }
 0xb30   :  { %3930 = vmatprep.mubr.msk.f32.mxu0 %vm364_vm8, %v4766_v24 }
 0xb31   :  { %3931 = vmatmul.mubr.msk.f32.vlgmr.msra.gmra.mrb[22].mxu0 %vm364_vm8, %v4768_v0 }
 0xc04   :  { %v3932_v38 = vpop.f32.mrb[22].mxu0 }
 0xc05   :  { %v1823_v39 = vadd.f32 %v3932_v38, %v3583_v37  ;;  %v1817_v40 = vpop.f32.mrb[23].mxu0 }
 0xc06   :  { %v1818_v41 = vadd.f32 %v3583_v37, %v1817_v40 }
 0xc07   :  { %v1827_v42 = vmul.f32 0.70710677, %v1823_v39  ;;  %v1875_v30 = vmul.f32 0.5, %v1823_v39 }
 0xc08   :  { %v1826_v43 = vmul.f32 0.70710677, %v1818_v41  ;;  %v1874_v28 = vmul.f32 0.5, %v1818_v41 }
 0xc09   :  { %v1829_v44 = vand.u32 2147483647, %v1827_v42  ;;  %vm1869_vm12 = vcmp.ge.f32.partialorder %v1827_v42, 0.0 }
 0xc0a   :  { %v1828_v47 = vand.u32 2147483647, %v1826_v43  ;;  %vm1868_vm13 = vcmp.ge.f32.partialorder %v1826_v43, 0.0 }
 0xc0b   :  { %v1831_v49 = vmul.f32 0.3275911, %v1829_v44  ;;  %v1857_v53 = vsub.f32 0.0, %v1829_v44 }
 0xc0c   :  { %v1830_v50 = vmul.f32 0.3275911, %v1828_v47  ;;  %v1856_v54 = vsub.f32 0.0, %v1828_v47 }
 0xc0d   :  { %v1833_v51 = vadd.f32 1.0, %v1831_v49  ;;  %v1859_v57 = vmul.f32 %v1857_v53, %v1829_v44 }
 0xc0e   :  { %v1832_v52 = vadd.f32 1.0, %v1830_v50  ;;  %v1858_v61 = vmul.f32 %v1856_v54, %v1828_v47  ;;  %v2017_v54 = vld [vmem:[%s5052_s2 + $0x260] sm:$0xff] }
 0xc0f   :  { %4312 = vrcp.f32 %v1833_v51  ;;  %v1862_v1 = vmul.f32 1.442695, %v1859_v57  ;;  %v2190_v57 = vld [vmem:[%s5052_s2 + $0x298] sm:$0xff] }
 0xc10   :  { %4314 = vrcp.f32 %v1832_v52  ;;  %v1860_v4 = vmul.f32 1.442695, %v1858_v61  ;;  %v2018_v61 = vld [vmem:[%s5052_s2 + $0x268] sm:$0xff] }
 0xc11   :  { %4316 = vpow2.f32 %v1862_v1  ;;  %v2192_v1 = vld [vmem:[%s5052_s2 + $0x2a8] sm:$0xff] }
 0xc12   :  { %4318 = vpow2.f32 %v1860_v4  ;;  %v2106_v4 = vld [vmem:[%s5052_s2 + $0x278] sm:$0xff] }
 0xc19   :  { %v4313_v55 = vpop.eup %4312 }
 0xc1a   :  { %v4315_v59 = vpop.eup %4314  ;;  %v1839_v60 = vmul.f32 1.0614054, %v4313_v55 }
 0xc1b   :  { %v1838_v62 = vmul.f32 1.0614054, %v4315_v59  ;;  %v4317_v14 = vpop.eup %4316 }
 0xc1c   :  { %v1841_v63 = vadd.f32 -1.4531521, %v1839_v60  ;;  %v4319_v58 = vpop.eup %4318 }
 0xc1d   :  { %v1840_v2 = vadd.f32 -1.4531521, %v1838_v62  ;;  %v2019_v62 = vld [vmem:[%s5052_s2 + $0x270] sm:$0xff] }
 0xc1e   :  { %v1843_v3 = vmul.f32 %v4313_v55, %v1841_v63  ;;  %v4216_v63 = vpack.c.bf16 %v2019_v62, %v2018_v61  ;;  %v2596_v61 = vld [vmem:[%s5052_s2 + $0x2e0] sm:$0xff]  ;;  %v2597_v62 = vld [vmem:[%s5052_s2 + $0x2e8] sm:$0xff] }
 0xc1f   :  { %v1842_v45 = vmul.f32 %v4315_v59, %v1840_v2  ;;  %v2193_v2 = vld [vmem:[%s5052_s2 + $0x2b0] sm:$0xff] }
 0xc20   :  { %v1845_v46 = vadd.f32 1.4214138, %v1843_v3  ;;  %v4232_v3 = vpack.c.bf16 %v2193_v2, %v2192_v1  ;;  %v2680_v1 = vld [vmem:[%s5052_s2 + $0x300] sm:$0xff]  ;;  %v2681_v2 = vld [vmem:[%s5052_s2 + $0x308] sm:$0xff] }
 0xc21   :  { %v1844_v5 = vadd.f32 1.4214138, %v1842_v45  ;;  %v2107_v45 = vld [vmem:[%s5052_s2 + $0x280] sm:$0xff] }
 0xc22   :  { %v1847_v6 = vmul.f32 %v4313_v55, %v1845_v46  ;;  %v4220_v46 = vpack.c.bf16 %v2107_v45, %v2106_v4 }
 0xc23   :  { %v1846_v7 = vmul.f32 %v4315_v59, %v1844_v5 }
 0xc24   :  { %v1849_v8 = vadd.f32 -0.28449672, %v1847_v6 }
 0xc25   :  { %v1848_v9 = vadd.f32 -0.28449672, %v1846_v7 }
 0xc26   :  { %v1851_v10 = vmul.f32 %v4313_v55, %v1849_v8 }
 0xc27   :  { %v1850_v11 = vmul.f32 %v4315_v59, %v1848_v9 }
 0xc28   :  { %v1853_v12 = vadd.f32 0.2548296, %v1851_v10 }
 0xc29   :  { %v1852_v56 = vadd.f32 0.2548296, %v1850_v11 }
 0xc2a   :  { %v1855_v13 = vmul.f32 %v4313_v55, %v1853_v12  ;;  %v3589_v12 = vld [vmem:[%s5052_s2 + $0x248] ss:$0 sm:$0xff] }
 0xc2b   :  { %v1854_v16 = vmul.f32 %v4315_v59, %v1852_v56  ;;  %v2191_v59 = vld [vmem:[%s5052_s2 + $0x2a0] sm:$0xff] }
 0xc2c   :  { %v1865_v17 = vmul.f32 %v4317_v14, %v1855_v13  ;;  %v4228_v60 = vpack.c.bf16 %v2191_v59, %v2190_v57 }
 0xc2d   :  { %v1864_v18 = vmul.f32 %v4319_v58, %v1854_v16  ;;  %v3590_v16 = vld [vmem:[%s5052_s2 + $0x250] ss:$0 sm:$0xff] }
 0xc2e   :  { %v1867_v19 = vsub.f32 1.0, %v1865_v17  ;;  %4229 = vmatprep.subr.bf16.mxu1 %v4228_v60 }
 0xc2f   :  { %v1866_v21 = vsub.f32 1.0, %v1864_v18  ;;  %v2108_v18 = vld [vmem:[%s5052_s2 + $0x288] sm:$0xff] }
 0xc30   :  { %v1871_v22 = vsub.f32 0.0, %v1867_v19 }
 0xc31   :  { %v1870_v23 = vsub.f32 0.0, %v1866_v21 }
 0xc32   :  { %v1873_v25 = vsel %vm1869_vm12, %v1867_v19, %v1871_v22  ;;  %v2109_v19 = vld [vmem:[%s5052_s2 + $0x290] sm:$0xff] }
 0xc33   :  { %v1877_v26 = vadd.f32 1.0, %v1873_v25  ;;  %v1872_v27 = vsel %vm1868_vm13, %v1866_v21, %v1870_v23  ;;  %v4224_v23 = vpack.c.bf16 %v2109_v19, %v2108_v18  ;;  %v3597_v25 = vld [vmem:[%s5052_s2 + $0x2c8] ss:$0 sm:$0xff] }
 0xc34   :  { %v1876_v29 = vadd.f32 1.0, %v1872_v27 }
 0xc35   :  { %v1879_v32 = vmul.f32 %v1877_v26, %v1875_v30 }
 0xc36   :  { %v1878_v31 = vmul.f32 %v1876_v29, %v1874_v28 }
 0xc38   :  { %3949 = vmatprep.mubr.msk.f32.mxu1 %vm267_vm5, %v1878_v31  ;;  %v3594_v31 = vld [vmem:[%s5052_s2 + $0x2c0] ss:$0 sm:$0xff] }
 0xc39   :  { %3950 = vmatmul.mubr.msk.f32.vlgmr.msra.gmra.mrb[26].mxu1 %vm267_vm5, %v1879_v32 }
 0xc3a   :  { %4231 = vmatpush3.bf16.msra.mxu1 %v4228_v60 }
 0xc3b   :  { %4233 = vmatprep.subr.bf16.mxu1 %v4232_v3 }
 0xc3e   :  { %4235 = vmatpush3.bf16.msra.mxu1 %v4232_v3  ;;  %v4244_v3 = vpack.c.bf16 %v2681_v2, %v2680_v1 }
 0xc3f   :  { %3995 = vmatprep.subr.mxu1 %v4370_v48 }
 0xd0c   :  { %v3951_v34 = vpop.f32.mrb[26].mxu1 }
 0xd0d   :  { %v1971_v35 = vadd.f32 %v3951_v34, %v3586_v33  ;;  %v1965_v36 = vpop.f32.mrb[27].mxu1  ;;  %v3591_v34 = vld [vmem:[%s5052_s2 + $0x2b8] ss:$0 sm:$0xff] }
 0xd0e   :  { %v1966_v37 = vadd.f32 %v3586_v33, %v1965_v36 }
 0xd0f   :  { %v1975_v38 = vadd.f32 %v1971_v35, %v4768_v0 }
 0xd10   :  { %v1974_v40 = vadd.f32 %v1966_v37, %v4766_v24  ;;  %v2016_v24 = vld [vmem:[%s5052_s2 + $0x258] sm:$0xff] }
 0xd11   :  { %v1981_v39 = vsel %vm364_vm8, %v1975_v38, 0.0  ;;  %v4212_v55 = vpack.c.bf16 %v2017_v54, %v2016_v24 }
 0xd12   :  { %1982 = vadd.xlane.f32.xlu0 %v1981_v39  ;;  %v1978_v41 = vsel %vm364_vm8, %v1974_v40, 0.0 }
 0xd13   :  { %1979 = vadd.xlane.f32.xlu1 %v1978_v41  ;;  %4213 = vmatprep.subr.bf16.mxu0 %v4212_v55 }
 0xd14   :  { %4215 = vmatpush3.bf16.msra.mxu0 %v4212_v55 }
 0xd15   :  { %4217 = vmatprep.subr.bf16.mxu0 %v4216_v63 }
 0xd18   :  { %4219 = vmatpush3.bf16.msra.mxu0 %v4216_v63  ;;  %v4236_v63 = vpack.c.bf16 %v2597_v62, %v2596_v61 }
 0xd19   :  { %4221 = vmatprep.subr.bf16.mxu0 %v4220_v46 }
 0xd9f   :  { %v1983_v42 = vpop.xlane.xlu0 %1982 }
 0xda0   :  { %v1985_v43 = vmul.f32 0.03125, %v1983_v42  ;;  %v1980_v44 = vpop.xlane.xlu1 %1979 }
 0xda1   :  { %v1984_v47 = vmul.f32 0.03125, %v1980_v44 }
 0xda2   :  { %v1987_v49 = vsub.f32 %v1975_v38, %v1985_v43 }
 0xda3   :  { %v1986_v50 = vsub.f32 %v1974_v40, %v1984_v47 }
 0xda4   :  { %v1989_v51 = vmul.f32 %v1987_v49, %v1987_v49 }
 0xda5   :  { %v1988_v52 = vmul.f32 %v1986_v50, %v1986_v50 }
 0xda6   :  { %v1993_v53 = vsel %vm364_vm8, %v1989_v51, 0.0 }
 0xda7   :  { %1994 = vadd.xlane.f32.xlu0 %v1993_v53  ;;  %v1990_v0 = vsel %vm364_vm8, %v1988_v52, 0.0 }
 0xda8   :  { %1991 = vadd.xlane.f32.xlu1 %v1990_v0 }
 0xe34   :  { %v1995_v5 = vpop.xlane.xlu0 %1994 }
 0xe35   :  { %v1997_v6 = vmul.f32 0.03125, %v1995_v5  ;;  %v1992_v7 = vpop.xlane.xlu1 %1991  ;;  %v2599_v5 = vld [vmem:[%s5052_s2 + $0x2f8] sm:$0xff] }
 0xe36   :  { %v1996_v8 = vmul.f32 0.03125, %v1992_v7 }
 0xe37   :  { %v1999_v9 = vadd.f32 1e-12, %v1997_v6 }
 0xe38   :  { %v1998_v10 = vadd.f32 1e-12, %v1996_v8 }
 0xe39   :  { %4320 = vrsqrt.f32 %v1999_v9  ;;  %v2682_v9 = vld [vmem:[%s5052_s2 + $0x310] sm:$0xff] }
 0xe3a   :  { %4322 = vrsqrt.f32 %v1998_v10  ;;  %v2683_v10 = vld [vmem:[%s5052_s2 + $0x318] sm:$0xff] }
 0xe43   :  { %v4321_v11 = vpop.eup %4320 }
 0xe44   :  { %v4323_v56 = vpop.eup %4322  ;;  %v2003_v13 = vmul.f32 %v4321_v11, %v1987_v49  ;;  %v2764_v11 = vld [vmem:[%s5052_s2 + $0x320] sm:$0xff] }
 0xe45   :  { %v2002_v14 = vmul.f32 %v4323_v56, %v1986_v50 }
 0xe46   :  { %v2009_v58 = vmul.f32 %v3589_v12, %v2003_v13 }
 0xe47   :  { %v2008_v17 = vmul.f32 %v3589_v12, %v2002_v14  ;;  %v2765_v12 = vld [vmem:[%s5052_s2 + $0x328] sm:$0xff]  ;;  %v4248_v14 = vpack.c.bf16 %v2683_v10, %v2682_v9 }
 0xe48   :  { %v4857_v22 = vadd.f32 %v3590_v16, %v2009_v58  ;;  %v2766_v58 = vld [vmem:[%s5052_s2 + $0x330] sm:$0xff] }
 0xe49   :  { %v4855_v21 = vadd.f32 %v3590_v16, %v2008_v17  ;;  %v4252_v16 = vpack.c.bf16 %v2765_v12, %v2764_v11  ;;  %v2767_v17 = vld [vmem:[%s5052_s2 + $0x338] sm:$0xff]  ;;  %v3625_v11 = vld [vmem:[%s5052_s2 + $0x368] ss:$0 sm:$0xff] }
 0xe4a   :  { %v4256_v18 = vpack.c.bf16 %v2767_v17, %v2766_v58 }
 0xe4b   :  { %3960 = vmatprep.mubr.msk.f32.mxu0 %vm364_vm8, %v4855_v21  ;;  %3982 = vmatprep.mubr.msk.f32.mxu1 %vm364_vm8, %v4855_v21 }
 0xe4c   :  { %3961 = vmatmul.mubr.msk.f32.vlgmr.msra.gmra.mrb[24].mxu0 %vm364_vm8, %v4857_v22  ;;  %3983 = vmatmul.mubr.msk.f32.vlgmr.msra.gmra.mrb[28].mxu1 %vm364_vm8, %v4857_v22 }
 0xe4d   :  { %4223 = vmatpush3.bf16.msra.mxu0 %v4220_v46  ;;  %3971 = vmatprep.mubr.msk.f32.mxu0 %vm364_vm8, %v4855_v21  ;;  %v2598_v46 = vld [vmem:[%s5052_s2 + $0x2f0] sm:$0xff] }
 0xe4e   :  { %4225 = vmatprep.subr.bf16.mxu0 %v4224_v23  ;;  %3997 = vmatprep.mubr.msk.f32.mxu1 %vm4372_vm9, %v4370_v48  ;;  %v4240_v8 = vpack.c.bf16 %v2599_v5, %v2598_v46  ;;  %v2594_v46 = vld [vmem:[%s5052_s2 + $0x2d0] sm:$0xff]  ;;  %v2595_v5 = vld [vmem:[%s5052_s2 + $0x2d8] sm:$0xff] }
 0xe51   :  { %4227 = vmatpush3.bf16.msra.mxu0 %v4224_v23 }
 0xe52   :  { %3985 = vmatprep.subr.mxu0 %v4370_v48 }
 0xe54   :  { %3972 = vmatmul.mubr.msk.f32.vlgmr.msra.gmra.mrb[26].mxu0 %vm364_vm8, %v4857_v22 }
 0xe55   :  { %3987 = vmatprep.mubr.msk.f32.mxu0 %vm4372_vm9, %v4370_v48 }
 0xf1f   :  { %v3962_v26 = vpop.f32.mrb[24].mxu0  ;;  %v3984_v27 = vpop.f32.mrb[28].mxu1 }
 0xf20   :  { %v2097_v28 = vpop.f32.mrb[25].mxu0  ;;  %v2265_v29 = vpop.f32.mrb[29].mxu1  ;;  %v2103_v38 = vadd.f32 %v3962_v26, %v3591_v34  ;;  %v2271_v40 = vadd.f32 %v3984_v27, %v3597_v25 }
 0xf21   :  { %v2266_v30 = vadd.f32 %v3597_v25, %v2265_v29  ;;  %v2098_v36 = vadd.f32 %v3591_v34, %v2097_v28  ;;  %v3609_v29 = vld [vmem:[%s5052_s2 + $0x348] ss:$0 sm:$0xff]  ;;  %v3612_v34 = vld [vmem:[%s5052_s2 + $0x350] ss:$0 sm:$0xff] }
 0xf23   :  { %3996 = vmatpush3.msra.mxu1 %v2266_v30 }
 0xf24   :  { %4237 = vmatprep.subr.bf16.mxu1 %v4236_v63 }
 0xf27   :  { %v3973_v32 = vpop.f32.mrb[26].mxu0 }
 0xf28   :  { %v2181_v33 = vpop.f32.mrb[27].mxu0  ;;  %v2187_v37 = vadd.f32 %v3973_v32, %v3594_v31  ;;  %v3606_v32 = vld [vmem:[%s5052_s2 + $0x340] ss:$0 sm:$0xff] }
 0xf29   :  { %v2182_v35 = vadd.f32 %v3594_v31, %v2181_v33 }
 0xf2b   :  { %3986 = vmatpush3.xpose.msk.msra.mxu0 %vm626_vm10, %v2182_v35 }
 0xf2c   :  { %3990 = vmatprep.subr.mxu0 %v4370_v48 }
 0xf2e   :  { %3988 = vmatmul.mubr.msk.f32.vlgmr.msra.gmra.mrb[28].mxu0 %vm626_vm10, %v2098_v36 }
 0xf2f   :  { %3991 = vmatpush3.xpose.msk.msra.mxu0 %vm626_vm10, %v2187_v37  ;;  %3992 = vmatprep.mubr.msk.f32.mxu0 %vm4372_vm9, %v4370_v48 }
 0xf30   :  { %4000 = vmatprep.subr.mxu0 %v4370_v48 }
 0xf32   :  { %3993 = vmatmul.mubr.msk.f32.vlgmr.msra.gmra.mrb[30].mxu0 %vm626_vm10, %v2103_v38 }
 0xf33   :  { %4001 = vmatpush3.msra.mxu0 %v2271_v40  ;;  %4002 = vmatprep.mubr.msk.f32.mxu0 %vm4372_vm9, %v4370_v48 }
 0xf34   :  { %4245 = vmatprep.subr.bf16.mxu0 %v4244_v3 }
0x1001   :  { %v2346_v39 = vpop.f32.mrb[28].mxu0 }
0x1002   :  { %v2347_v41 = vadd.f32 %v2346_v39, %v4639_v15  ;;  %v3989_v42 = vpop.f32.mrb[29].mxu0 }
0x1004   :  { %v2426_v43 = vsel %vm779_vm11, %v2347_v41, -inf }
0x1005   :  { %2427 = vmax.xlane.f32.xlu0 %v2426_v43  ;;  %v2422_v44 = vpop.f32.mrb[30].mxu0 }
0x1006   :  { %v2423_v47 = vadd.f32 %v2422_v44, %v4642_v20  ;;  %v3994_v49 = vpop.f32.mrb[31].mxu0 }
0x1008   :  { %v2429_v50 = vsel %vm779_vm11, %v2423_v47, -inf }
0x1009   :  { %2430 = vmax.xlane.f32.xlu1 %v2429_v50 }
0x1092   :  { %v2428_v51 = vpop.xlane.xlu0 %2427 }
0x1093   :  { %v2432_v52 = vsub.f32 %v2347_v41, %v2428_v51 }
0x1095   :  { %v2434_v53 = vmul.f32 1.442695, %v2432_v52 }
0x1096   :  { %v2431_v0 = vpop.xlane.xlu1 %2430 }
0x1097   :  { %4324 = vpow2.f32 %v2434_v53  ;;  %v2433_v24 = vsub.f32 %v2423_v47, %v2431_v0 }
0x1099   :  { %v2436_v54 = vmul.f32 1.442695, %v2433_v24 }
0x109b   :  { %4326 = vpow2.f32 %v2436_v54 }
0x10a1   :  { %v4325_v55 = vpop.eup %4324 }
0x10a2   :  { %v2438_v57 = vsel %vm779_vm11, %v4325_v55, 0.0 }
0x10a3   :  { %2439 = vadd.xlane.f32.xlu0 %v2438_v57 }
0x10a5   :  { %v4327_v59 = vpop.eup %4326 }
0x10a6   :  { %v2441_v60 = vsel %vm779_vm11, %v4327_v59, 0.0 }
0x10a7   :  { %2442 = vadd.xlane.f32.xlu1 %v2441_v60 }
0x1130   :  { %v2440_v4 = vpop.xlane.xlu0 %2439 }
0x1131   :  { %4328 = vrcp.f32 %v2440_v4  ;;  %v3169_v4 = vld [vmem:[%s5052_s2 + $0x360] sm:$0xff] }
0x1134   :  { %v2443_v45 = vpop.xlane.xlu1 %2442 }
0x1135   :  { %4330 = vrcp.f32 %v2443_v45 }
0x113b   :  { %v4329_v6 = vpop.eup %4328 }
0x113c   :  { %v2445_v7 = vmul.f32 %v4329_v6, %v4325_v55  ;;  %v4264_v6 = vpack.c.bf16 %v2595_v5, %v2594_v46 }
0x113e   :  { %3998 = vmatmul.mubr.msk.f32.vlgmr.msra.gmra.mrb[30].mxu1 %vm779_vm11, %v2445_v7 }
0x113f   :  { %v4331_v56 = vpop.eup %4330  ;;  %4239 = vmatpush3.bf16.msra.mxu1 %v4236_v63  ;;  %4013 = vmatprep.mubr.msk.f32.mxu1 %vm364_vm8, %v4855_v21 }
0x1140   :  { %v2447_v13 = vmul.f32 %v4331_v56, %v4327_v59  ;;  %4241 = vmatprep.subr.bf16.mxu1 %v4240_v8 }
0x1142   :  { %4003 = vmatmul.mubr.msk.f32.vlgmr.msra.gmra.mrb[32].mxu0 %vm779_vm11, %v2447_v13 }
0x1143   :  { %4243 = vmatpush3.bf16.msra.mxu1 %v4240_v8  ;;  %4247 = vmatpush3.bf16.msra.mxu0 %v4244_v3  ;;  %v3168_v3 = vld [vmem:[%s5052_s2 + $0x358] sm:$0xff] }
0x1144   :  { %4024 = vmatprep.mubr.msk.f32.mxu0 %vm364_vm8, %v4855_v21  ;;  %4249 = vmatprep.subr.bf16.mxu0 %v4248_v14  ;;  %v4260_v45 = vpack.c.bf16 %v3169_v4, %v3168_v3 }
0x1145   :  { %4253 = vmatprep.subr.bf16.mxu1 %v4252_v16 }
0x1146   :  { %4014 = vmatmul.mubr.msk.f32.vlgmr.msra.gmra.mrb[32].mxu1 %vm364_vm8, %v4857_v22 }
0x1147   :  { %4251 = vmatpush3.bf16.msra.mxu0 %v4248_v14  ;;  %4255 = vmatpush3.bf16.msra.mxu1 %v4252_v16 }
0x1148   :  { %4035 = vmatprep.mubr.msk.f32.mxu1 %vm364_vm8, %v4855_v21  ;;  %4257 = vmatprep.subr.bf16.mxu1 %v4256_v18 }
0x1149   :  { %4038 = vmatprep.subr.mxu0 %v4370_v48 }
0x114a   :  { %4025 = vmatmul.mubr.msk.f32.vlgmr.msra.gmra.mrb[34].mxu0 %vm364_vm8, %v4857_v22 }
0x114b   :  { %4259 = vmatpush3.bf16.msra.mxu1 %v4256_v18  ;;  %4040 = vmatprep.mubr.msk.f32.mxu0 %vm4372_vm9, %v4370_v48 }
0x114c   :  { %4048 = vmatprep.subr.mxu1 %v4370_v48 }
0x114e   :  { %4036 = vmatmul.mubr.msk.f32.vlgmr.msra.gmra.mrb[34].mxu1 %vm364_vm8, %v4857_v22 }
0x114f   :  { %4050 = vmatprep.mubr.msk.f32.mxu1 %vm4372_vm9, %v4370_v48 }
0x1211   :  { %v4957_v19 = vpop.f32.mrb[30].mxu1 }
0x1212   :  { %v3999_v23 = vpop.f32.mrb[31].mxu1 }
0x1215   :  { %v4959_v25 = vpop.f32.mrb[32].mxu0 }
0x1216   :  { %v4004_v26 = vpop.f32.mrb[33].mxu0 }
0x1219   :  { %v4015_v27 = vpop.f32.mrb[32].mxu1 }
0x121a   :  { %v2671_v28 = vpop.f32.mrb[33].mxu1  ;;  %v2677_v39 = vadd.f32 %v4015_v27, %v3606_v32 }
0x121b   :  { %v2672_v36 = vadd.f32 %v3606_v32, %v2671_v28  ;;  %v3382_v32 = vld [vmem:[%s5052_s2 + $0x388] sm:$0xff] }
0x121d   :  { %v4026_v30 = vpop.f32.mrb[34].mxu0 }
0x121e   :  { %v2755_v31 = vpop.f32.mrb[35].mxu0  ;;  %v2761_v38 = vadd.f32 %v4026_v30, %v3609_v29 }
0x121f   :  { %v2756_v33 = vadd.f32 %v3609_v29, %v2755_v31 }
0x1221   :  { %v4037_v35 = vpop.f32.mrb[34].mxu1  ;;  %4039 = vmatpush3.xpose.msk.msra.mxu0 %vm626_vm10, %v2756_v33 }
0x1222   :  { %v2839_v37 = vpop.f32.mrb[35].mxu1  ;;  %4043 = vmatprep.subr.mxu0 %v4370_v48  ;;  %v2845_v41 = vadd.f32 %v4037_v35, %v3612_v34  ;;  %v3384_v35 = vld [vmem:[%s5052_s2 + $0x398] sm:$0xff] }
0x1223   :  { %v2840_v40 = vadd.f32 %v3612_v34, %v2839_v37  ;;  %v3383_v34 = vld [vmem:[%s5052_s2 + $0x390] sm:$0xff] }
0x1224   :  { %4041 = vmatmul.mubr.msk.f32.vlgmr.msra.gmra.mrb[36].mxu0 %vm626_vm10, %v2672_v36  ;;  %v4272_v36 = vpack.c.bf16 %v3384_v35, %v3383_v34 }
0x1225   :  { %4044 = vmatpush3.xpose.msk.msra.mxu0 %vm626_vm10, %v2761_v38  ;;  %4049 = vmatpush3.msra.mxu1 %v2840_v40 }
0x1226   :  { %4045 = vmatprep.mubr.msk.f32.mxu0 %vm4372_vm9, %v4370_v48  ;;  %4053 = vmatprep.subr.mxu0 %v4370_v48 }
0x1227   :  { %4261 = vmatprep.subr.bf16.mxu1 %v4260_v45 }
0x1228   :  { %4046 = vmatmul.mubr.msk.f32.vlgmr.msra.gmra.mrb[38].mxu0 %vm626_vm10, %v2677_v39 }
0x1229   :  { %4054 = vmatpush3.msra.mxu0 %v2845_v41  ;;  %4055 = vmatprep.mubr.msk.f32.mxu0 %vm4372_vm9, %v4370_v48 }
0x12f7   :  { %v2920_v42 = vpop.f32.mrb[36].mxu0 }
0x12f8   :  { %v2921_v43 = vadd.f32 %v2920_v42, %v4639_v15  ;;  %v4042_v44 = vpop.f32.mrb[37].mxu0 }
0x12f9   :  { %v3626_v44 = vld [vmem:[%s5052_s2 + $0x370] ss:$0 sm:$0xff] }
0x12fa   :  { %v3000_v47 = vsel %vm779_vm11, %v2921_v43, -inf }
0x12fb   :  { %3001 = vmax.xlane.f32.xlu1 %v3000_v47  ;;  %v2996_v49 = vpop.f32.mrb[38].mxu0 }
0x12fc   :  { %v2997_v50 = vadd.f32 %v2996_v49, %v4642_v20  ;;  %v4047_v51 = vpop.f32.mrb[39].mxu0 }
0x12fd   :  { %v3627_v51 = vld [vmem:[%s5052_s2 + $0x378] ss:$0 sm:$0xff] }
0x12fe   :  { %v3003_v52 = vsel %vm779_vm11, %v2997_v50, -inf }
0x12ff   :  { %3004 = vmax.xlane.f32.xlu0 %v3003_v52 }
0x1388   :  { %v3002_v53 = vpop.xlane.xlu1 %3001 }
0x1389   :  { %v3006_v0 = vsub.f32 %v2921_v43, %v3002_v53 }
0x138b   :  { %v3008_v24 = vmul.f32 1.442695, %v3006_v0 }
0x138c   :  { %v3005_v54 = vpop.xlane.xlu0 %3004 }
0x138d   :  { %4332 = vpow2.f32 %v3008_v24  ;;  %v3007_v48 = vsub.f32 %v2997_v50, %v3005_v54  ;;  %v3628_v54 = vld [vmem:[%s5052_s2 + $0x3a0] ss:$0 sm:$0xff] }
0x138f   :  { %v3010_v55 = vmul.f32 1.442695, %v3007_v48 }
0x1391   :  { %4334 = vpow2.f32 %v3010_v55 }
0x1397   :  { %v4333_v15 = vpop.eup %4332 }
0x1398   :  { %v3012_v57 = vsel %vm779_vm11, %v4333_v15, 0.0 }
0x1399   :  { %3013 = vadd.xlane.f32.xlu1 %v3012_v57 }
0x139b   :  { %v4335_v59 = vpop.eup %4334 }
0x139c   :  { %v3015_v60 = vsel %vm779_vm11, %v4335_v59, 0.0 }
0x139d   :  { %3016 = vadd.xlane.f32.xlu0 %v3015_v60 }
0x1426   :  { %v3014_v20 = vpop.xlane.xlu1 %3013 }
0x1427   :  { %4336 = vrcp.f32 %v3014_v20 }
0x142a   :  { %v3017_v61 = vpop.xlane.xlu0 %3016 }
0x142b   :  { %4338 = vrcp.f32 %v3017_v61 }
0x1431   :  { %v4337_v62 = vpop.eup %4336 }
0x1432   :  { %v3019_v63 = vmul.f32 %v4337_v62, %v4333_v15 }
0x1434   :  { %4051 = vmatmul.mubr.msk.f32.vlgmr.msra.gmra.mrb[36].mxu1 %vm779_vm11, %v3019_v63 }
0x1435   :  { %v4339_v1 = vpop.eup %4338  ;;  %4263 = vmatpush3.bf16.msra.mxu1 %v4260_v45 }
0x1436   :  { %v3021_v2 = vmul.f32 %v4339_v1, %v4335_v59  ;;  %4265 = vmatprep.subr.bf16.mxu1 %v4264_v6 }
0x1438   :  { %4056 = vmatmul.mubr.msk.f32.vlgmr.msra.gmra.mrb[40].mxu0 %vm779_vm11, %v3021_v2 }
0x1507   :  { %v3091_v7 = vpop.f32.mrb[36].mxu1 }
0x1508   :  { %v4052_v8 = vpop.f32.mrb[37].mxu1  ;;  %4062 = vmatprep.mubr.msk.f32.mxu1 %vm626_vm10, %v3091_v7 }
0x150b   :  { %v3164_v9 = vpop.f32.mrb[40].mxu0 }
0x150c   :  { %v4057_v10 = vpop.f32.mrb[41].mxu0  ;;  %4063 = vmatmul.mubr.msk.f32.vlgmr.msra.gmra.mrb[38].mxu1 %vm626_vm10, %v3164_v9 }
0x150d   :  { %4267 = vmatpush3.bf16.msra.mxu1 %v4264_v6  ;;  %4069 = vmatprep.mubr.msk.f32.mxu1 %vm626_vm10, %v4957_v19 }
0x1514   :  { %4070 = vmatmul.mubr.msk.f32.vlgmr.msra.gmra.mrb[38].mxu1 %vm626_vm10, %v4959_v25 }
0x15e7   :  { %v4071_v12 = vpop.f32.mrb[38].mxu1 }
0x15e8   :  { %v3338_v56 = vadd.f32 %v4071_v12, %v3625_v11  ;;  %v3323_v13 = vpop.f32.mrb[39].mxu1 }
0x15e9   :  { %v3337_v14 = vadd.f32 %v3625_v11, %v3323_v13 }
0x15ea   :  { %v3340_v16 = vadd.f32 %v3338_v56, %v4857_v22 }
0x15eb   :  { %v3339_v58 = vadd.f32 %v3337_v14, %v4855_v21  ;;  %v3381_v21 = vld [vmem:[%s5052_s2 + $0x380] sm:$0xff]  ;;  %s4344_s2 = scalar_lea.vmem %s3500_s10, 64 }
0x15ec   :  { %v3346_v17 = vsel %vm364_vm8, %v3340_v16, 0.0  ;;  %v4268_v33 = vpack.c.bf16 %v3382_v32, %v3381_v21  ;;  %p4345_p0 = scmp.ne.s32.totalorder %s3500_s10, %s4344_s2  ;;  %p4350_p2 = scmp.lt.s32.totalorder %s4344_s2, %s4344_s2 }
0x15ed   :  { %3347 = vadd.xlane.f32.xlu0 %v3346_v17  ;;  %v3343_v18 = vsel %vm364_vm8, %v3339_v58, 0.0 }
0x15ee   :  { %3344 = vadd.xlane.f32.xlu1 %v3343_v18  ;;  %4269 = vmatprep.subr.bf16.mxu0 %v4268_v33  ;;  %p4351_p3 = por %p4350_p2, %p4349_p1 }
0x15ef   :  { %4271 = vmatpush3.bf16.msra.mxu0 %v4268_v33 }
0x15f0   :  { %4273 = vmatprep.subr.bf16.mxu0 %v4272_v36  ;;  %p4352_p4 = pnand %p4351_p3, %p4345_p0 }
0x15f3   :  { %4275 = vmatpush3.bf16.msra.mxu0 %v4272_v36 }
0x167a   :  { %v3348_v19 = vpop.xlane.xlu0 %3347 }
0x167b   :  { %v3350_v23 = vmul.f32 0.03125, %v3348_v19  ;;  %v3345_v25 = vpop.xlane.xlu1 %3344 }
0x167c   :  { %v3349_v26 = vmul.f32 0.03125, %v3345_v25 }
0x167d   :  { %v3352_v27 = vsub.f32 %v3340_v16, %v3350_v23 }
0x167e   :  { %v3351_v28 = vsub.f32 %v3339_v58, %v3349_v26 }
0x167f   :  { %v3354_v29 = vmul.f32 %v3352_v27, %v3352_v27 }
0x1680   :  { %v3353_v30 = vmul.f32 %v3351_v28, %v3351_v28 }
0x1681   :  { %v3358_v31 = vsel %vm364_vm8, %v3354_v29, 0.0 }
0x1682   :  { %3359 = vadd.xlane.f32.xlu0 %v3358_v31  ;;  %v3355_v22 = vsel %vm364_vm8, %v3353_v30, 0.0 }
0x1683   :  { %3356 = vadd.xlane.f32.xlu1 %v3355_v22 }
0x170f   :  { %v3360_v37 = vpop.xlane.xlu0 %3359 }
0x1710   :  { %v3362_v38 = vmul.f32 0.03125, %v3360_v37  ;;  %v3357_v40 = vpop.xlane.xlu1 %3356 }
0x1711   :  { %v3361_v39 = vmul.f32 0.03125, %v3357_v40 }
0x1712   :  { %v3364_v41 = vadd.f32 1e-12, %v3362_v38 }
0x1713   :  { %v3363_v42 = vadd.f32 1e-12, %v3361_v39 }
0x1714   :  { %4340 = vrsqrt.f32 %v3364_v41 }
0x1715   :  { %4342 = vrsqrt.f32 %v3363_v42 }
0x171e   :  { %v4341_v43 = vpop.eup %4340 }
0x171f   :  { %v4343_v47 = vpop.eup %4342  ;;  %v3368_v49 = vmul.f32 %v4341_v43, %v3352_v27 }
0x1720   :  { %v3367_v50 = vmul.f32 %v4343_v47, %v3351_v28 }
0x1721   :  { %v3374_v52 = vmul.f32 %v3626_v44, %v3368_v49 }
0x1722   :  { %v3373_v53 = vmul.f32 %v3626_v44, %v3367_v50 }
0x1723   :  { %v3380_v24 = vadd.f32 %v3627_v51, %v3374_v52 }
0x1724   :  { %v3379_v0 = vadd.f32 %v3627_v51, %v3373_v53 }
0x1726   :  { %4080 = vmatprep.mubr.msk.f32.mxu0 %vm364_vm8, %v3379_v0 }
0x1727   :  { %4081 = vmatmul.mubr.msk.f32.vlgmr.msra.gmra.mrb[42].mxu0 %vm364_vm8, %v3380_v24 }
0x17fa   :  { %v4082_v48 = vpop.f32.mrb[42].mxu0 }
0x17fb   :  { %v3468_v55 = vadd.f32 %v4082_v48, %v3628_v54  ;;  %v3462_v15 = vpop.f32.mrb[43].mxu0 }
0x17fc   :  { %v3463_v57 = vadd.f32 %v3628_v54, %v3462_v15 }
0x17fd   :  { %v4281_v59 = vround.rtne.f32 %v3468_v55 }
0x17fe   :  { %v4280_v60 = vround.rtne.f32 %v3463_v57 }
0x17ff   :  { %v3474_v20 = vmax.f32 %v4281_v59, -128.0 }
0x1800   :  { %v3473_v61 = vmax.f32 %v4280_v60, -128.0 }
0x1801   :  { %v3476_v62 = vmin.f32 %v3474_v20, 127.0 }
0x1802   :  { %v3475_v63 = vmin.f32 %v3473_v61, 127.0 }
0x1803   :  { %v3478_v1 = vtrunc.f32 %v3476_v62 }
0x1804   :  { %v3477_v2 = vtrunc.f32 %v3475_v63 }
0x1806   :  { %v3479_v3 = vpack.c.f32.eXmY %v3477_v2, %v3478_v1, 312 }
0x1808   :  { %v3483_v4 = vpack.c.b8 %v3479_v3, %v3479_v3 }
0x180a   :  { %v3485_v45 = vunpack.c.0.s8 %v3483_v4  ;;  %v3486_v46 = vunpack.c.1.s8 %v3483_v4 }
0x180c   :  { %v3487_v5 = vpack.c.b16 %v3485_v45, %v3485_v45  ;;  %v3489_v6 = vpack.c.b16 %v3486_v46, %v3486_v46 }
0x180e   :  { %v3488_v7 = vpack.c.b8 %v3487_v5, %v3487_v5  ;;  %v3490_v8 = vpack.c.b8 %v3489_v6, %v3489_v6 }
0x1810   :  { %3492 = vst.msk [vmem:[#allocation2] sm:$0x3] %vm3491_vm14, %v3488_v7  ;;  %3493 = vst.msk [vmem:[#allocation2 + $0x2] sm:$0x3] %vm3491_vm14, %v3490_v8 }
0x1811   :  { %4355 = shalt.err (!%p4352_p4)
}
0x1812   :  { %s4356_s13 = scalar_lea.hbm %s5053_s3, 64 }
0x1813   :  { %p4357_p5 = scmp.ne.s32.totalorder %s5053_s3, %s4356_s13  ;;  %p4360_p6 = scmp.lt.u32.totalorder %s4356_s13, %s5053_s3 }
0x1815   :  { %p4362_p7 = pnand %p4360_p6, %p4357_p5 }
0x1817   :  { %4365 = shalt.err (!%p4362_p7)
}
0x1818   :  { %s4374_s0 = smov 32   ;;  %s4375_s18 = smov 2  }
0x1819   :  { %3505 = dma.vmem_to_hbm [thread:$0]  %s3500_s10, 64, %s5053_s3, [#allocation3], %s4374_s0, %s4374_s0, %s4375_s18  }
0x181a   :  { %4366 = dma.done.wait [#allocation3], 64  }
0x181b   :  { %4367 = vsyncadd [#allocation3], 4294967232 }
0x181c   :  { %3509 = vsyncpa [#allocation3], 1 }

</bundles_post_ra>
